<compile_context>
chip_gen: v6e
topology: v6e:2x2x1
jax: 0.10.0
libtpu: 0.0.40
codegen_flags: <defaults>
</compile_context>

<pallas_src>
import functools

import jax
import jax.numpy as jnp
from jax import lax
from jax.experimental import pallas as pl
from jax.experimental.pallas import tpu as pltpu


def _tensorcores_per_chip() -> int:
    """2 on megacore-style parts (v4 / v5p / v7x), else 1 (v5e / v6e / v2 / v3)."""
    try:
        kind = jax.devices()[0].device_kind.lower()
    except Exception:
        return 1
    if "lite" in kind or "v5e" in kind or "v6e" in kind or "v6 " in kind:
        return 1
    if "v4" in kind or "v5p" in kind or "v7" in kind or "7x" in kind:
        return 2
    return 1


def _sigmoid_via_tanh(x):
    # sigmoid(x) == 0.5 * tanh(0.5 * x) + 0.5 : one EUP op + one VPU fma.
    return 0.5 * jnp.tanh(0.5 * x) + 0.5


def _lstm_recurrent_kernel(gx_ref, whh_ref, h_ref, c_sc,
                           *, hidden, block_t, seq_len, mask_tail):
    """One grid step == `block_t` LSTM timesteps for one batch block.

    gx_ref  : (block_t, bt, 4H) bf16 -- precomputed x_t @ W_ih + b (time-major,
              gate order [i, f, o, g])
    whh_ref : (H, 4H)           bf16 -- recurrent weight (same gate order)
    h_ref   : (bt, H)           f32  -- OUTPUT block; block index is constant
              along the time axis so it is VMEM-resident and doubles as the
              hidden-state carry.  Its last write is h_last.
    c_sc    : (bt, H)           f32  -- VMEM scratch cell state.
    """
    t_blk = pl.program_id(1)
    n_t = pl.num_programs(1)
    H = hidden

    @pl.when(t_blk == 0)
    def _():
        h_ref[...] = jnp.zeros_like(h_ref)
        c_sc[...] = jnp.zeros_like(c_sc)

    def run_block(masked):
        def step(tt, carry):
            h, c = carry
            gx = gx_ref[tt].astype(jnp.float32)                       # (bt, 4H)
            gates = gx + jnp.dot(h.astype(jnp.bfloat16), whh_ref[...],
                                 preferred_element_type=jnp.float32)  # f32 acc
            # Gate order [i, f, o, g]: one contiguous sigmoid slab + one tanh.
            # H is a multiple of 128 -> lane-tile-aligned free views.
            ifo = _sigmoid_via_tanh(gates[:, 0:3 * H])
            g_g = jnp.tanh(gates[:, 3 * H:4 * H])
            i_g = ifo[:, 0 * H:1 * H]
            f_g = ifo[:, 1 * H:2 * H]
            o_g = ifo[:, 2 * H:3 * H]
            c_new = f_g * c + i_g * g_g
            h_new = o_g * jnp.tanh(c_new)
            if masked:
                # Freeze the state on padded tail steps.
                valid = (t_blk * block_t + tt) < seq_len
                h_new = jnp.where(valid, h_new, h)
                c_new = jnp.where(valid, c_new, c)
            return h_new, c_new

        h, c = lax.fori_loop(0, block_t, step, (h_ref[...], c_sc[...]),
                             unroll=True)
        h_ref[...] = h
        c_sc[...] = c

    if mask_tail:
        # Padding only exists in the last time block; steady-state blocks stay
        # free of the per-step selects.
        @pl.when(t_blk == n_t - 1)
        def _():
            run_block(masked=True)

        @pl.when(t_blk != n_t - 1)
        def _():
            run_block(masked=False)
    else:
        run_block(masked=False)


def rnn_model_forward(x_tokens, params, *, block_t_cap=32):
    """Forward pass equivalent to RNNModel.forward (PyTorch)."""
    emb = params["embedding"]          # (V, E)  f32
    w_ih = params["w_ih"]              # (E, 4H) f32, gate order [i,f,g,o]
    w_hh = params["w_hh"]              # (H, 4H) f32, gate order [i,f,g,o]
    b = params["b"]                    # (1, 4H) f32 == b_ih + b_hh
    w_fc = params["w_fc"]              # (H, V)  f32
    b_fc = params["b_fc"]              # (1, V)  f32

    B, T = x_tokens.shape
    H = w_hh.shape[0]

    # One-time gate reorder [i,f,g,o] -> [i,f,o,g] (tiny weight shuffle, zero
    # cost on the recurrent path).
    def ifgo_to_ifog(w):
        i, f, g, o = jnp.split(w, 4, axis=-1)
        return jnp.concatenate([i, f, o, g], axis=-1)

    w_ih_r, w_hh_r, b_r = ifgo_to_ifog(w_ih), ifgo_to_ifog(w_hh), ifgo_to_ifog(b)

    # ---- XLA glue: time-major embedding gather (no (B,T,E)->(T,B,E) transpose)
    #      + hoisted input projection, bias folded in, cast to bf16. ----
    x_emb = jnp.take(emb, x_tokens.T, axis=0)                        # (T, B, E)
    gates_x = (jnp.einsum("tbe,eg->tbg", x_emb, w_ih_r)
               + b_r.reshape(1, 1, -1)).astype(jnp.bfloat16)         # (T, B, 4H)
    w_hh_bf16 = w_hh_r.astype(jnp.bfloat16)

    # Time blocking: as few grid steps as possible (<= block_t_cap unrolled
    # timesteps per grid step) with minimal tail padding.
    num_t_blocks = pl.cdiv(T, block_t_cap)
    block_t = pl.cdiv(T, num_t_blocks)
    t_pad = num_t_blocks * block_t

    # Batch: pad to a sublane multiple.  Split across blocks only when the chip
    # has 2 TensorCores (otherwise the "parallel" axis is just a serial outer
    # loop that halves the MXU M-dim); cap rows/block at 64 to bound the live
    # h/c vreg carry inside the unrolled step loop.
    b_pad = pl.cdiv(B, 8) * 8
    bt = b_pad
    if _tensorcores_per_chip() >= 2 and b_pad >= 16:
        bt = b_pad // 2
    while bt > 64 and bt % 16 == 0:
        bt //= 2
    num_b_blocks = b_pad // bt

    gates_x = jnp.pad(gates_x, ((0, t_pad - T), (0, b_pad - B), (0, 0)))

    kernel = functools.partial(
        _lstm_recurrent_kernel,
        hidden=H, block_t=block_t, seq_len=T, mask_tail=(t_pad != T))

    # VMEM budget: gates_x (double-buffered bf16) + W_hh (single-buffered bf16)
    # + h out block + c scratch (f32).
    need = (2 * block_t * bt * 4 * H * 2
            + H * 4 * H * 2
            + 2 * bt * H * 4)
    vmem_limit = int(min(96 * 2**20, max(32 * 2**20, 2 * need)))

    h_last = pl.pallas_call(
        kernel,
        out_shape=jax.ShapeDtypeStruct((b_pad, H), jnp.float32),
        grid_spec=pltpu.PrefetchScalarGridSpec(
            num_scalar_prefetch=0,
            grid=(num_b_blocks, num_t_blocks),
            in_specs=[
                pl.BlockSpec((block_t, bt, 4 * H), lambda bi, ti: (ti, bi, 0)),
                # Constant block index -> revisited weight; single-buffer it.
                pl.BlockSpec((H, 4 * H), lambda bi, ti: (0, 0),
                             pipeline_mode=pl.Buffered(buffer_count=1)),
            ],
            out_specs=pl.BlockSpec((bt, H), lambda bi, ti: (bi, 0)),
            scratch_shapes=[
                pltpu.VMEM((bt, H), jnp.float32),   # c state
            ],
        ),
        compiler_params=pltpu.CompilerParams(
            dimension_semantics=("parallel", "arbitrary"),
            vmem_limit_bytes=vmem_limit,
        ),
    )(gates_x, w_hh_bf16)

    h_last = h_last[:B]                               # drop batch padding
    # ---- Final Linear hoisted out of the kernel (used once). ----
    return h_last @ w_fc + b_fc


def init_params(key, vocab_size, embed_size, hidden_size):
    ks = jax.random.split(key, 6)
    scale = 0.1
    return {
        "embedding": scale * jax.random.normal(
            ks[0], (vocab_size, embed_size), jnp.float32),
        # PyTorch weight_ih_l0 is (4H, E); we store its transpose (E, 4H).
        "w_ih": scale * jax.random.normal(
            ks[1], (embed_size, 4 * hidden_size), jnp.float32),
        "w_hh": scale * jax.random.normal(
            ks[2], (hidden_size, 4 * hidden_size), jnp.float32),
        # b == b_ih + b_hh, kept 2D for TPU-friendly broadcast.
        "b": scale * jax.random.normal(
            ks[3], (1, 4 * hidden_size), jnp.float32),
        "w_fc": scale * jax.random.normal(
            ks[4], (hidden_size, vocab_size), jnp.float32),
        "b_fc": scale * jax.random.normal(
            ks[5], (1, vocab_size), jnp.float32),
    }


def _reference_forward(x_tokens, params):
    """Pure-JAX reference mirroring the kernel math (incl. bf16 weight storage),
    in the original PyTorch gate order [i, f, g, o]."""
    x_emb = jnp.take(params["embedding"], x_tokens, axis=0)         # (B, T, E)
    B, T, _ = x_emb.shape
    H = params["w_hh"].shape[0]
    gates_x = (jnp.einsum("bte,eg->btg", x_emb, params["w_ih"])
               + params["b"].reshape(1, 1, -1)).astype(jnp.bfloat16)
    w_hh = params["w_hh"].astype(jnp.bfloat16)
    h = jnp.zeros((B, H), jnp.float32)
    c = jnp.zeros((B, H), jnp.float32)
    for t in range(T):
        gates = (gates_x[:, t, :].astype(jnp.float32)
                 + jnp.dot(h.astype(jnp.bfloat16), w_hh,
                           preferred_element_type=jnp.float32))
        i = jax.nn.sigmoid(gates[:, 0 * H:1 * H])
        f = jax.nn.sigmoid(gates[:, 1 * H:2 * H])
        g = jnp.tanh(gates[:, 2 * H:3 * H])
        o = jax.nn.sigmoid(gates[:, 3 * H:4 * H])
        c = f * c + i * g
        h = o * jnp.tanh(c)
    return h @ params["w_fc"] + params["b_fc"]


if __name__ == "__main__":
    # H multiple of 128 so gate slices are lane-aligned; batch pads 4 -> 8.
    vocab_size, embed_size, hidden_size = 256, 64, 128
    batch, seq = 4, 12

    key = jax.random.PRNGKey(0)
    k_tok, k_par = jax.random.split(key)
    x_tokens = jax.random.randint(k_tok, (batch, seq), 0, vocab_size,
                                  dtype=jnp.int32)
    params = init_params(k_par, vocab_size, embed_size, hidden_size)

    # Path 1: default cap -> one time block (block_t = T), no tail padding.
    logits = jax.block_until_ready(rnn_model_forward(x_tokens, params))
    ref = jax.block_until_ready(_reference_forward(x_tokens, params))
    assert logits.shape == (batch, vocab_size)
    assert jnp.allclose(logits, ref, atol=1e-2, rtol=1e-2), \
        float(jnp.max(jnp.abs(logits - ref)))

    # Path 2: multiple time blocks + padded tail (T=11, cap=4 -> block_t=4,
    # t_pad=12), exercising state carry across blocks and the masked last block.
    x_short = x_tokens[:, :11]
    logits2 = jax.block_until_ready(
        rnn_model_forward(x_short, params, block_t_cap=4))
    ref2 = jax.block_until_ready(_reference_forward(x_short, params))
    assert jnp.allclose(logits2, ref2, atol=1e-2, rtol=1e-2), \
        float(jnp.max(jnp.abs(logits2 - ref2)))

    print("KERNEL_OK")
</pallas_src>

<mosaic_0001>
module attributes {stable_mosaic.version = 11 : i64} {
  func.func @_lstm_recurrent_kernel(%arg0: i32, %arg1: i32, %arg2: memref<12x8x512xbf16, #tpu.memory_space<vmem>>, %arg3: memref<128x512xbf16, #tpu.memory_space<vmem>>, %arg4: memref<8x128xf32, #tpu.memory_space<vmem>>, %arg5: memref<8x128xf32, #tpu.memory_space<vmem>>) attributes {dimension_semantics = [#tpu.dimension_semantics<parallel>, #tpu.dimension_semantics<arbitrary>], iteration_bounds = array<i64: 1, 1>, scalar_prefetch = 0 : i64, scratch_operands = 1 : i64, tpu.core_type = #tpu.core_type<tc>, window_params = [{transform_indices = @transform_0, window_bounds = array<i64: 12, 8, 512>}, {pipeline_mode = #tpu.pipeline_mode<synchronous>, transform_indices = @transform_1, window_bounds = array<i64: 128, 512>}, {transform_indices = @transform_2, window_bounds = array<i64: 8, 128>}]} {
    %c0_i32 = arith.constant 0 : i32
    %0 = arith.cmpi eq, %arg1, %c0_i32 : i32
    %1 = arith.extui %0 : i1 to i32
    %c0_i32_0 = arith.constant 0 : i32
    %2 = arith.cmpi ne, %1, %c0_i32_0 : i32
    scf.if %2 {
      %cst_104 = arith.constant 0.000000e+00 : f32
      %319 = vector.broadcast %cst_104 : f32 to vector<8x128xf32>
      %c0_105 = arith.constant 0 : index
      %c0_106 = arith.constant 0 : index
      %320 = vector.load %arg4[%c0_105, %c0_106] : memref<8x128xf32, #tpu.memory_space<vmem>>, vector<8x128xf32>
      tpu.vector_store %arg4[%c0_105, %c0_106], %319 {strides = array<i32>} : memref<8x128xf32, #tpu.memory_space<vmem>>, vector<8x128xf32>,
      %cst_107 = arith.constant 0.000000e+00 : f32
      %321 = vector.broadcast %cst_107 : f32 to vector<8x128xf32>
      %c0_108 = arith.constant 0 : index
      %c0_109 = arith.constant 0 : index
      %322 = vector.load %arg5[%c0_108, %c0_109] : memref<8x128xf32, #tpu.memory_space<vmem>>, vector<8x128xf32>
      tpu.vector_store %arg5[%c0_108, %c0_109], %321 {strides = array<i32>} : memref<8x128xf32, #tpu.memory_space<vmem>>, vector<8x128xf32>,
    } else {
    }
    %c0 = arith.constant 0 : index
    %c0_1 = arith.constant 0 : index
    %3 = vector.load %arg4[%c0, %c0_1] : memref<8x128xf32, #tpu.memory_space<vmem>>, vector<8x128xf32>
    %c0_2 = arith.constant 0 : index
    %c0_3 = arith.constant 0 : index
    %4 = vector.load %arg5[%c0_2, %c0_3] : memref<8x128xf32, #tpu.memory_space<vmem>>, vector<8x128xf32>
    %c0_i32_4 = arith.constant 0 : i32
    %5 = arith.index_cast %c0_i32_4 : i32 to index
    %c0_5 = arith.constant 0 : index
    %c0_6 = arith.constant 0 : index
    %6 = vector.load %arg2[%5, %c0_5, %c0_6] : memref<12x8x512xbf16, #tpu.memory_space<vmem>>, vector<1x8x512xbf16>
    %7 = vector.shape_cast %6 : vector<1x8x512xbf16> to vector<8x512xbf16>
    %8 = arith.extf %7 : vector<8x512xbf16> to vector<8x512xf32>
    %9 = arith.truncf %3 : vector<8x128xf32> to vector<8x128xbf16>
    %c0_7 = arith.constant 0 : index
    %c0_8 = arith.constant 0 : index
    %10 = vector.load %arg3[%c0_7, %c0_8] : memref<128x512xbf16, #tpu.memory_space<vmem>>, vector<128x512xbf16>
    %cst = arith.constant dense<0.000000e+00> : vector<8x512xf32>
    %11 = tpu.matmul %9, %10, %cst {dimension_numbers = #tpu.dot_dimension_numbers<[1], [0], [0], [1], [0, 0, 1, 1], [], []>} : vector<8x128xbf16>, vector<128x512xbf16>, vector<8x512xf32> -> vector<8x512xf32>
    %12 = arith.addf %8, %11 : vector<8x512xf32>
    %13 = vector.extract_strided_slice %12 {offsets = [0, 0], sizes = [8, 384], strides = [1, 1]} : vector<8x512xf32> to vector<8x384xf32>
    %cst_9 = arith.constant 5.000000e-01 : f32
    %14 = vector.broadcast %cst_9 : f32 to vector<8x384xf32>
    %15 = arith.mulf %14, %13 : vector<8x384xf32>
    %16 = math.tanh %15 : vector<8x384xf32>
    %cst_10 = arith.constant 5.000000e-01 : f32
    %17 = vector.broadcast %cst_10 : f32 to vector<8x384xf32>
    %18 = arith.mulf %17, %16 : vector<8x384xf32>
    %cst_11 = arith.constant 5.000000e-01 : f32
    %19 = vector.broadcast %cst_11 : f32 to vector<8x384xf32>
    %20 = arith.addf %18, %19 : vector<8x384xf32>
    %21 = vector.extract_strided_slice %12 {offsets = [0, 384], sizes = [8, 128], strides = [1, 1]} : vector<8x512xf32> to vector<8x128xf32>
    %22 = math.tanh %21 : vector<8x128xf32>
    %23 = vector.extract_strided_slice %20 {offsets = [0, 0], sizes = [8, 128], strides = [1, 1]} : vector<8x384xf32> to vector<8x128xf32>
    %24 = vector.extract_strided_slice %20 {offsets = [0, 128], sizes = [8, 128], strides = [1, 1]} : vector<8x384xf32> to vector<8x128xf32>
    %25 = vector.extract_strided_slice %20 {offsets = [0, 256], sizes = [8, 128], strides = [1, 1]} : vector<8x384xf32> to vector<8x128xf32>
    %26 = arith.mulf %24, %4 : vector<8x128xf32>
    %27 = arith.mulf %23, %22 : vector<8x128xf32>
    %28 = arith.addf %26, %27 : vector<8x128xf32>
    %29 = math.tanh %28 : vector<8x128xf32>
    %30 = arith.mulf %25, %29 : vector<8x128xf32>
    %c1_i32 = arith.constant 1 : i32
    %31 = arith.index_cast %c1_i32 : i32 to index
    %c0_12 = arith.constant 0 : index
    %c0_13 = arith.constant 0 : index
    %32 = vector.load %arg2[%31, %c0_12, %c0_13] : memref<12x8x512xbf16, #tpu.memory_space<vmem>>, vector<1x8x512xbf16>
    %33 = vector.shape_cast %32 : vector<1x8x512xbf16> to vector<8x512xbf16>
    %34 = arith.extf %33 : vector<8x512xbf16> to vector<8x512xf32>
    %35 = arith.truncf %30 : vector<8x128xf32> to vector<8x128xbf16>
    %c0_14 = arith.constant 0 : index
    %c0_15 = arith.constant 0 : index
    %36 = vector.load %arg3[%c0_14, %c0_15] : memref<128x512xbf16, #tpu.memory_space<vmem>>, vector<128x512xbf16>
    %cst_16 = arith.constant dense<0.000000e+00> : vector<8x512xf32>
    %37 = tpu.matmul %35, %36, %cst_16 {dimension_numbers = #tpu.dot_dimension_numbers<[1], [0], [0], [1], [0, 0, 1, 1], [], []>} : vector<8x128xbf16>, vector<128x512xbf16>, vector<8x512xf32> -> vector<8x512xf32>
    %38 = arith.addf %34, %37 : vector<8x512xf32>
    %39 = vector.extract_strided_slice %38 {offsets = [0, 0], sizes = [8, 384], strides = [1, 1]} : vector<8x512xf32> to vector<8x384xf32>
    %cst_17 = arith.constant 5.000000e-01 : f32
    %40 = vector.broadcast %cst_17 : f32 to vector<8x384xf32>
    %41 = arith.mulf %40, %39 : vector<8x384xf32>
    %42 = math.tanh %41 : vector<8x384xf32>
    %cst_18 = arith.constant 5.000000e-01 : f32
    %43 = vector.broadcast %cst_18 : f32 to vector<8x384xf32>
    %44 = arith.mulf %43, %42 : vector<8x384xf32>
    %cst_19 = arith.constant 5.000000e-01 : f32
    %45 = vector.broadcast %cst_19 : f32 to vector<8x384xf32>
    %46 = arith.addf %44, %45 : vector<8x384xf32>
    %47 = vector.extract_strided_slice %38 {offsets = [0, 384], sizes = [8, 128], strides = [1, 1]} : vector<8x512xf32> to vector<8x128xf32>
    %48 = math.tanh %47 : vector<8x128xf32>
    %49 = vector.extract_strided_slice %46 {offsets = [0, 0], sizes = [8, 128], strides = [1, 1]} : vector<8x384xf32> to vector<8x128xf32>
    %50 = vector.extract_strided_slice %46 {offsets = [0, 128], sizes = [8, 128], strides = [1, 1]} : vector<8x384xf32> to vector<8x128xf32>
    %51 = vector.extract_strided_slice %46 {offsets = [0, 256], sizes = [8, 128], strides = [1, 1]} : vector<8x384xf32> to vector<8x128xf32>
    %52 = arith.mulf %50, %28 : vector<8x128xf32>
    %53 = arith.mulf %49, %48 : vector<8x128xf32>
    %54 = arith.addf %52, %53 : vector<8x128xf32>
    %55 = math.tanh %54 : vector<8x128xf32>
    %56 = arith.mulf %51, %55 : vector<8x128xf32>
    %c2_i32 = arith.constant 2 : i32
    %57 = arith.index_cast %c2_i32 : i32 to index
    %c0_20 = arith.constant 0 : index
    %c0_21 = arith.constant 0 : index
    %58 = vector.load %arg2[%57, %c0_20, %c0_21] : memref<12x8x512xbf16, #tpu.memory_space<vmem>>, vector<1x8x512xbf16>
    %59 = vector.shape_cast %58 : vector<1x8x512xbf16> to vector<8x512xbf16>
    %60 = arith.extf %59 : vector<8x512xbf16> to vector<8x512xf32>
    %61 = arith.truncf %56 : vector<8x128xf32> to vector<8x128xbf16>
    %c0_22 = arith.constant 0 : index
    %c0_23 = arith.constant 0 : index
    %62 = vector.load %arg3[%c0_22, %c0_23] : memref<128x512xbf16, #tpu.memory_space<vmem>>, vector<128x512xbf16>
    %cst_24 = arith.constant dense<0.000000e+00> : vector<8x512xf32>
    %63 = tpu.matmul %61, %62, %cst_24 {dimension_numbers = #tpu.dot_dimension_numbers<[1], [0], [0], [1], [0, 0, 1, 1], [], []>} : vector<8x128xbf16>, vector<128x512xbf16>, vector<8x512xf32> -> vector<8x512xf32>
    %64 = arith.addf %60, %63 : vector<8x512xf32>
    %65 = vector.extract_strided_slice %64 {offsets = [0, 0], sizes = [8, 384], strides = [1, 1]} : vector<8x512xf32> to vector<8x384xf32>
    %cst_25 = arith.constant 5.000000e-01 : f32
    %66 = vector.broadcast %cst_25 : f32 to vector<8x384xf32>
    %67 = arith.mulf %66, %65 : vector<8x384xf32>
    %68 = math.tanh %67 : vector<8x384xf32>
    %cst_26 = arith.constant 5.000000e-01 : f32
    %69 = vector.broadcast %cst_26 : f32 to vector<8x384xf32>
    %70 = arith.mulf %69, %68 : vector<8x384xf32>
    %cst_27 = arith.constant 5.000000e-01 : f32
    %71 = vector.broadcast %cst_27 : f32 to vector<8x384xf32>
    %72 = arith.addf %70, %71 : vector<8x384xf32>
    %73 = vector.extract_strided_slice %64 {offsets = [0, 384], sizes = [8, 128], strides = [1, 1]} : vector<8x512xf32> to vector<8x128xf32>
    %74 = math.tanh %73 : vector<8x128xf32>
    %75 = vector.extract_strided_slice %72 {offsets = [0, 0], sizes = [8, 128], strides = [1, 1]} : vector<8x384xf32> to vector<8x128xf32>
    %76 = vector.extract_strided_slice %72 {offsets = [0, 128], sizes = [8, 128], strides = [1, 1]} : vector<8x384xf32> to vector<8x128xf32>
    %77 = vector.extract_strided_slice %72 {offsets = [0, 256], sizes = [8, 128], strides = [1, 1]} : vector<8x384xf32> to vector<8x128xf32>
    %78 = arith.mulf %76, %54 : vector<8x128xf32>
    %79 = arith.mulf %75, %74 : vector<8x128xf32>
    %80 = arith.addf %78, %79 : vector<8x128xf32>
    %81 = math.tanh %80 : vector<8x128xf32>
    %82 = arith.mulf %77, %81 : vector<8x128xf32>
    %c3_i32 = arith.constant 3 : i32
    %83 = arith.index_cast %c3_i32 : i32 to index
    %c0_28 = arith.constant 0 : index
    %c0_29 = arith.constant 0 : index
    %84 = vector.load %arg2[%83, %c0_28, %c0_29] : memref<12x8x512xbf16, #tpu.memory_space<vmem>>, vector<1x8x512xbf16>
    %85 = vector.shape_cast %84 : vector<1x8x512xbf16> to vector<8x512xbf16>
    %86 = arith.extf %85 : vector<8x512xbf16> to vector<8x512xf32>
    %87 = arith.truncf %82 : vector<8x128xf32> to vector<8x128xbf16>
    %c0_30 = arith.constant 0 : index
    %c0_31 = arith.constant 0 : index
    %88 = vector.load %arg3[%c0_30, %c0_31] : memref<128x512xbf16, #tpu.memory_space<vmem>>, vector<128x512xbf16>
    %cst_32 = arith.constant dense<0.000000e+00> : vector<8x512xf32>
    %89 = tpu.matmul %87, %88, %cst_32 {dimension_numbers = #tpu.dot_dimension_numbers<[1], [0], [0], [1], [0, 0, 1, 1], [], []>} : vector<8x128xbf16>, vector<128x512xbf16>, vector<8x512xf32> -> vector<8x512xf32>
    %90 = arith.addf %86, %89 : vector<8x512xf32>
    %91 = vector.extract_strided_slice %90 {offsets = [0, 0], sizes = [8, 384], strides = [1, 1]} : vector<8x512xf32> to vector<8x384xf32>
    %cst_33 = arith.constant 5.000000e-01 : f32
    %92 = vector.broadcast %cst_33 : f32 to vector<8x384xf32>
    %93 = arith.mulf %92, %91 : vector<8x384xf32>
    %94 = math.tanh %93 : vector<8x384xf32>
    %cst_34 = arith.constant 5.000000e-01 : f32
    %95 = vector.broadcast %cst_34 : f32 to vector<8x384xf32>
    %96 = arith.mulf %95, %94 : vector<8x384xf32>
    %cst_35 = arith.constant 5.000000e-01 : f32
    %97 = vector.broadcast %cst_35 : f32 to vector<8x384xf32>
    %98 = arith.addf %96, %97 : vector<8x384xf32>
    %99 = vector.extract_strided_slice %90 {offsets = [0, 384], sizes = [8, 128], strides = [1, 1]} : vector<8x512xf32> to vector<8x128xf32>
    %100 = math.tanh %99 : vector<8x128xf32>
    %101 = vector.extract_strided_slice %98 {offsets = [0, 0], sizes = [8, 128], strides = [1, 1]} : vector<8x384xf32> to vector<8x128xf32>
    %102 = vector.extract_strided_slice %98 {offsets = [0, 128], sizes = [8, 128], strides = [1, 1]} : vector<8x384xf32> to vector<8x128xf32>
    %103 = vector.extract_strided_slice %98 {offsets = [0, 256], sizes = [8, 128], strides = [1, 1]} : vector<8x384xf32> to vector<8x128xf32>
    %104 = arith.mulf %102, %80 : vector<8x128xf32>
    %105 = arith.mulf %101, %100 : vector<8x128xf32>
    %106 = arith.addf %104, %105 : vector<8x128xf32>
    %107 = math.tanh %106 : vector<8x128xf32>
    %108 = arith.mulf %103, %107 : vector<8x128xf32>
    %c4_i32 = arith.constant 4 : i32
    %109 = arith.index_cast %c4_i32 : i32 to index
    %c0_36 = arith.constant 0 : index
    %c0_37 = arith.constant 0 : index
    %110 = vector.load %arg2[%109, %c0_36, %c0_37] : memref<12x8x512xbf16, #tpu.memory_space<vmem>>, vector<1x8x512xbf16>
    %111 = vector.shape_cast %110 : vector<1x8x512xbf16> to vector<8x512xbf16>
    %112 = arith.extf %111 : vector<8x512xbf16> to vector<8x512xf32>
    %113 = arith.truncf %108 : vector<8x128xf32> to vector<8x128xbf16>
    %c0_38 = arith.constant 0 : index
    %c0_39 = arith.constant 0 : index
    %114 = vector.load %arg3[%c0_38, %c0_39] : memref<128x512xbf16, #tpu.memory_space<vmem>>, vector<128x512xbf16>
    %cst_40 = arith.constant dense<0.000000e+00> : vector<8x512xf32>
    %115 = tpu.matmul %113, %114, %cst_40 {dimension_numbers = #tpu.dot_dimension_numbers<[1], [0], [0], [1], [0, 0, 1, 1], [], []>} : vector<8x128xbf16>, vector<128x512xbf16>, vector<8x512xf32> -> vector<8x512xf32>
    %116 = arith.addf %112, %115 : vector<8x512xf32>
    %117 = vector.extract_strided_slice %116 {offsets = [0, 0], sizes = [8, 384], strides = [1, 1]} : vector<8x512xf32> to vector<8x384xf32>
    %cst_41 = arith.constant 5.000000e-01 : f32
    %118 = vector.broadcast %cst_41 : f32 to vector<8x384xf32>
    %119 = arith.mulf %118, %117 : vector<8x384xf32>
    %120 = math.tanh %119 : vector<8x384xf32>
    %cst_42 = arith.constant 5.000000e-01 : f32
    %121 = vector.broadcast %cst_42 : f32 to vector<8x384xf32>
    %122 = arith.mulf %121, %120 : vector<8x384xf32>
    %cst_43 = arith.constant 5.000000e-01 : f32
    %123 = vector.broadcast %cst_43 : f32 to vector<8x384xf32>
    %124 = arith.addf %122, %123 : vector<8x384xf32>
    %125 = vector.extract_strided_slice %116 {offsets = [0, 384], sizes = [8, 128], strides = [1, 1]} : vector<8x512xf32> to vector<8x128xf32>
    %126 = math.tanh %125 : vector<8x128xf32>
    %127 = vector.extract_strided_slice %124 {offsets = [0, 0], sizes = [8, 128], strides = [1, 1]} : vector<8x384xf32> to vector<8x128xf32>
    %128 = vector.extract_strided_slice %124 {offsets = [0, 128], sizes = [8, 128], strides = [1, 1]} : vector<8x384xf32> to vector<8x128xf32>
    %129 = vector.extract_strided_slice %124 {offsets = [0, 256], sizes = [8, 128], strides = [1, 1]} : vector<8x384xf32> to vector<8x128xf32>
    %130 = arith.mulf %128, %106 : vector<8x128xf32>
    %131 = arith.mulf %127, %126 : vector<8x128xf32>
    %132 = arith.addf %130, %131 : vector<8x128xf32>
    %133 = math.tanh %132 : vector<8x128xf32>
    %134 = arith.mulf %129, %133 : vector<8x128xf32>
    %c5_i32 = arith.constant 5 : i32
    %135 = arith.index_cast %c5_i32 : i32 to index
    %c0_44 = arith.constant 0 : index
    %c0_45 = arith.constant 0 : index
    %136 = vector.load %arg2[%135, %c0_44, %c0_45] : memref<12x8x512xbf16, #tpu.memory_space<vmem>>, vector<1x8x512xbf16>
    %137 = vector.shape_cast %136 : vector<1x8x512xbf16> to vector<8x512xbf16>
    %138 = arith.extf %137 : vector<8x512xbf16> to vector<8x512xf32>
    %139 = arith.truncf %134 : vector<8x128xf32> to vector<8x128xbf16>
    %c0_46 = arith.constant 0 : index
    %c0_47 = arith.constant 0 : index
    %140 = vector.load %arg3[%c0_46, %c0_47] : memref<128x512xbf16, #tpu.memory_space<vmem>>, vector<128x512xbf16>
    %cst_48 = arith.constant dense<0.000000e+00> : vector<8x512xf32>
    %141 = tpu.matmul %139, %140, %cst_48 {dimension_numbers = #tpu.dot_dimension_numbers<[1], [0], [0], [1], [0, 0, 1, 1], [], []>} : vector<8x128xbf16>, vector<128x512xbf16>, vector<8x512xf32> -> vector<8x512xf32>
    %142 = arith.addf %138, %141 : vector<8x512xf32>
    %143 = vector.extract_strided_slice %142 {offsets = [0, 0], sizes = [8, 384], strides = [1, 1]} : vector<8x512xf32> to vector<8x384xf32>
    %cst_49 = arith.constant 5.000000e-01 : f32
    %144 = vector.broadcast %cst_49 : f32 to vector<8x384xf32>
    %145 = arith.mulf %144, %143 : vector<8x384xf32>
    %146 = math.tanh %145 : vector<8x384xf32>
    %cst_50 = arith.constant 5.000000e-01 : f32
    %147 = vector.broadcast %cst_50 : f32 to vector<8x384xf32>
    %148 = arith.mulf %147, %146 : vector<8x384xf32>
    %cst_51 = arith.constant 5.000000e-01 : f32
    %149 = vector.broadcast %cst_51 : f32 to vector<8x384xf32>
    %150 = arith.addf %148, %149 : vector<8x384xf32>
    %151 = vector.extract_strided_slice %142 {offsets = [0, 384], sizes = [8, 128], strides = [1, 1]} : vector<8x512xf32> to vector<8x128xf32>
    %152 = math.tanh %151 : vector<8x128xf32>
    %153 = vector.extract_strided_slice %150 {offsets = [0, 0], sizes = [8, 128], strides = [1, 1]} : vector<8x384xf32> to vector<8x128xf32>
    %154 = vector.extract_strided_slice %150 {offsets = [0, 128], sizes = [8, 128], strides = [1, 1]} : vector<8x384xf32> to vector<8x128xf32>
    %155 = vector.extract_strided_slice %150 {offsets = [0, 256], sizes = [8, 128], strides = [1, 1]} : vector<8x384xf32> to vector<8x128xf32>
    %156 = arith.mulf %154, %132 : vector<8x128xf32>
    %157 = arith.mulf %153, %152 : vector<8x128xf32>
    %158 = arith.addf %156, %157 : vector<8x128xf32>
    %159 = math.tanh %158 : vector<8x128xf32>
    %160 = arith.mulf %155, %159 : vector<8x128xf32>
    %c6_i32 = arith.constant 6 : i32
    %161 = arith.index_cast %c6_i32 : i32 to index
    %c0_52 = arith.constant 0 : index
    %c0_53 = arith.constant 0 : index
    %162 = vector.load %arg2[%161, %c0_52, %c0_53] : memref<12x8x512xbf16, #tpu.memory_space<vmem>>, vector<1x8x512xbf16>
    %163 = vector.shape_cast %162 : vector<1x8x512xbf16> to vector<8x512xbf16>
    %164 = arith.extf %163 : vector<8x512xbf16> to vector<8x512xf32>
    %165 = arith.truncf %160 : vector<8x128xf32> to vector<8x128xbf16>
    %c0_54 = arith.constant 0 : index
    %c0_55 = arith.constant 0 : index
    %166 = vector.load %arg3[%c0_54, %c0_55] : memref<128x512xbf16, #tpu.memory_space<vmem>>, vector<128x512xbf16>
    %cst_56 = arith.constant dense<0.000000e+00> : vector<8x512xf32>
    %167 = tpu.matmul %165, %166, %cst_56 {dimension_numbers = #tpu.dot_dimension_numbers<[1], [0], [0], [1], [0, 0, 1, 1], [], []>} : vector<8x128xbf16>, vector<128x512xbf16>, vector<8x512xf32> -> vector<8x512xf32>
    %168 = arith.addf %164, %167 : vector<8x512xf32>
    %169 = vector.extract_strided_slice %168 {offsets = [0, 0], sizes = [8, 384], strides = [1, 1]} : vector<8x512xf32> to vector<8x384xf32>
    %cst_57 = arith.constant 5.000000e-01 : f32
    %170 = vector.broadcast %cst_57 : f32 to vector<8x384xf32>
    %171 = arith.mulf %170, %169 : vector<8x384xf32>
    %172 = math.tanh %171 : vector<8x384xf32>
    %cst_58 = arith.constant 5.000000e-01 : f32
    %173 = vector.broadcast %cst_58 : f32 to vector<8x384xf32>
    %174 = arith.mulf %173, %172 : vector<8x384xf32>
    %cst_59 = arith.constant 5.000000e-01 : f32
    %175 = vector.broadcast %cst_59 : f32 to vector<8x384xf32>
    %176 = arith.addf %174, %175 : vector<8x384xf32>
    %177 = vector.extract_strided_slice %168 {offsets = [0, 384], sizes = [8, 128], strides = [1, 1]} : vector<8x512xf32> to vector<8x128xf32>
    %178 = math.tanh %177 : vector<8x128xf32>
    %179 = vector.extract_strided_slice %176 {offsets = [0, 0], sizes = [8, 128], strides = [1, 1]} : vector<8x384xf32> to vector<8x128xf32>
    %180 = vector.extract_strided_slice %176 {offsets = [0, 128], sizes = [8, 128], strides = [1, 1]} : vector<8x384xf32> to vector<8x128xf32>
    %181 = vector.extract_strided_slice %176 {offsets = [0, 256], sizes = [8, 128], strides = [1, 1]} : vector<8x384xf32> to vector<8x128xf32>
    %182 = arith.mulf %180, %158 : vector<8x128xf32>
    %183 = arith.mulf %179, %178 : vector<8x128xf32>
    %184 = arith.addf %182, %183 : vector<8x128xf32>
    %185 = math.tanh %184 : vector<8x128xf32>
    %186 = arith.mulf %181, %185 : vector<8x128xf32>
    %c7_i32 = arith.constant 7 : i32
    %187 = arith.index_cast %c7_i32 : i32 to index
    %c0_60 = arith.constant 0 : index
    %c0_61 = arith.constant 0 : index
    %188 = vector.load %arg2[%187, %c0_60, %c0_61] : memref<12x8x512xbf16, #tpu.memory_space<vmem>>, vector<1x8x512xbf16>
    %189 = vector.shape_cast %188 : vector<1x8x512xbf16> to vector<8x512xbf16>
    %190 = arith.extf %189 : vector<8x512xbf16> to vector<8x512xf32>
    %191 = arith.truncf %186 : vector<8x128xf32> to vector<8x128xbf16>
    %c0_62 = arith.constant 0 : index
    %c0_63 = arith.constant 0 : index
    %192 = vector.load %arg3[%c0_62, %c0_63] : memref<128x512xbf16, #tpu.memory_space<vmem>>, vector<128x512xbf16>
    %cst_64 = arith.constant dense<0.000000e+00> : vector<8x512xf32>
    %193 = tpu.matmul %191, %192, %cst_64 {dimension_numbers = #tpu.dot_dimension_numbers<[1], [0], [0], [1], [0, 0, 1, 1], [], []>} : vector<8x128xbf16>, vector<128x512xbf16>, vector<8x512xf32> -> vector<8x512xf32>
    %194 = arith.addf %190, %193 : vector<8x512xf32>
    %195 = vector.extract_strided_slice %194 {offsets = [0, 0], sizes = [8, 384], strides = [1, 1]} : vector<8x512xf32> to vector<8x384xf32>
    %cst_65 = arith.constant 5.000000e-01 : f32
    %196 = vector.broadcast %cst_65 : f32 to vector<8x384xf32>
    %197 = arith.mulf %196, %195 : vector<8x384xf32>
    %198 = math.tanh %197 : vector<8x384xf32>
    %cst_66 = arith.constant 5.000000e-01 : f32
    %199 = vector.broadcast %cst_66 : f32 to vector<8x384xf32>
    %200 = arith.mulf %199, %198 : vector<8x384xf32>
    %cst_67 = arith.constant 5.000000e-01 : f32
    %201 = vector.broadcast %cst_67 : f32 to vector<8x384xf32>
    %202 = arith.addf %200, %201 : vector<8x384xf32>
    %203 = vector.extract_strided_slice %194 {offsets = [0, 384], sizes = [8, 128], strides = [1, 1]} : vector<8x512xf32> to vector<8x128xf32>
    %204 = math.tanh %203 : vector<8x128xf32>
    %205 = vector.extract_strided_slice %202 {offsets = [0, 0], sizes = [8, 128], strides = [1, 1]} : vector<8x384xf32> to vector<8x128xf32>
    %206 = vector.extract_strided_slice %202 {offsets = [0, 128], sizes = [8, 128], strides = [1, 1]} : vector<8x384xf32> to vector<8x128xf32>
    %207 = vector.extract_strided_slice %202 {offsets = [0, 256], sizes = [8, 128], strides = [1, 1]} : vector<8x384xf32> to vector<8x128xf32>
    %208 = arith.mulf %206, %184 : vector<8x128xf32>
    %209 = arith.mulf %205, %204 : vector<8x128xf32>
    %210 = arith.addf %208, %209 : vector<8x128xf32>
    %211 = math.tanh %210 : vector<8x128xf32>
    %212 = arith.mulf %207, %211 : vector<8x128xf32>
    %c8_i32 = arith.constant 8 : i32
    %213 = arith.index_cast %c8_i32 : i32 to index
    %c0_68 = arith.constant 0 : index
    %c0_69 = arith.constant 0 : index
    %214 = vector.load %arg2[%213, %c0_68, %c0_69] : memref<12x8x512xbf16, #tpu.memory_space<vmem>>, vector<1x8x512xbf16>
    %215 = vector.shape_cast %214 : vector<1x8x512xbf16> to vector<8x512xbf16>
    %216 = arith.extf %215 : vector<8x512xbf16> to vector<8x512xf32>
    %217 = arith.truncf %212 : vector<8x128xf32> to vector<8x128xbf16>
    %c0_70 = arith.constant 0 : index
    %c0_71 = arith.constant 0 : index
    %218 = vector.load %arg3[%c0_70, %c0_71] : memref<128x512xbf16, #tpu.memory_space<vmem>>, vector<128x512xbf16>
    %cst_72 = arith.constant dense<0.000000e+00> : vector<8x512xf32>
    %219 = tpu.matmul %217, %218, %cst_72 {dimension_numbers = #tpu.dot_dimension_numbers<[1], [0], [0], [1], [0, 0, 1, 1], [], []>} : vector<8x128xbf16>, vector<128x512xbf16>, vector<8x512xf32> -> vector<8x512xf32>
    %220 = arith.addf %216, %219 : vector<8x512xf32>
    %221 = vector.extract_strided_slice %220 {offsets = [0, 0], sizes = [8, 384], strides = [1, 1]} : vector<8x512xf32> to vector<8x384xf32>
    %cst_73 = arith.constant 5.000000e-01 : f32
    %222 = vector.broadcast %cst_73 : f32 to vector<8x384xf32>
    %223 = arith.mulf %222, %221 : vector<8x384xf32>
    %224 = math.tanh %223 : vector<8x384xf32>
    %cst_74 = arith.constant 5.000000e-01 : f32
    %225 = vector.broadcast %cst_74 : f32 to vector<8x384xf32>
    %226 = arith.mulf %225, %224 : vector<8x384xf32>
    %cst_75 = arith.constant 5.000000e-01 : f32
    %227 = vector.broadcast %cst_75 : f32 to vector<8x384xf32>
    %228 = arith.addf %226, %227 : vector<8x384xf32>
    %229 = vector.extract_strided_slice %220 {offsets = [0, 384], sizes = [8, 128], strides = [1, 1]} : vector<8x512xf32> to vector<8x128xf32>
    %230 = math.tanh %229 : vector<8x128xf32>
    %231 = vector.extract_strided_slice %228 {offsets = [0, 0], sizes = [8, 128], strides = [1, 1]} : vector<8x384xf32> to vector<8x128xf32>
    %232 = vector.extract_strided_slice %228 {offsets = [0, 128], sizes = [8, 128], strides = [1, 1]} : vector<8x384xf32> to vector<8x128xf32>
    %233 = vector.extract_strided_slice %228 {offsets = [0, 256], sizes = [8, 128], strides = [1, 1]} : vector<8x384xf32> to vector<8x128xf32>
    %234 = arith.mulf %232, %210 : vector<8x128xf32>
    %235 = arith.mulf %231, %230 : vector<8x128xf32>
    %236 = arith.addf %234, %235 : vector<8x128xf32>
    %237 = math.tanh %236 : vector<8x128xf32>
    %238 = arith.mulf %233, %237 : vector<8x128xf32>
    %c9_i32 = arith.constant 9 : i32
    %239 = arith.index_cast %c9_i32 : i32 to index
    %c0_76 = arith.constant 0 : index
    %c0_77 = arith.constant 0 : index
    %240 = vector.load %arg2[%239, %c0_76, %c0_77] : memref<12x8x512xbf16, #tpu.memory_space<vmem>>, vector<1x8x512xbf16>
    %241 = vector.shape_cast %240 : vector<1x8x512xbf16> to vector<8x512xbf16>
    %242 = arith.extf %241 : vector<8x512xbf16> to vector<8x512xf32>
    %243 = arith.truncf %238 : vector<8x128xf32> to vector<8x128xbf16>
    %c0_78 = arith.constant 0 : index
    %c0_79 = arith.constant 0 : index
    %244 = vector.load %arg3[%c0_78, %c0_79] : memref<128x512xbf16, #tpu.memory_space<vmem>>, vector<128x512xbf16>
    %cst_80 = arith.constant dense<0.000000e+00> : vector<8x512xf32>
    %245 = tpu.matmul %243, %244, %cst_80 {dimension_numbers = #tpu.dot_dimension_numbers<[1], [0], [0], [1], [0, 0, 1, 1], [], []>} : vector<8x128xbf16>, vector<128x512xbf16>, vector<8x512xf32> -> vector<8x512xf32>
    %246 = arith.addf %242, %245 : vector<8x512xf32>
    %247 = vector.extract_strided_slice %246 {offsets = [0, 0], sizes = [8, 384], strides = [1, 1]} : vector<8x512xf32> to vector<8x384xf32>
    %cst_81 = arith.constant 5.000000e-01 : f32
    %248 = vector.broadcast %cst_81 : f32 to vector<8x384xf32>
    %249 = arith.mulf %248, %247 : vector<8x384xf32>
    %250 = math.tanh %249 : vector<8x384xf32>
    %cst_82 = arith.constant 5.000000e-01 : f32
    %251 = vector.broadcast %cst_82 : f32 to vector<8x384xf32>
    %252 = arith.mulf %251, %250 : vector<8x384xf32>
    %cst_83 = arith.constant 5.000000e-01 : f32
    %253 = vector.broadcast %cst_83 : f32 to vector<8x384xf32>
    %254 = arith.addf %252, %253 : vector<8x384xf32>
    %255 = vector.extract_strided_slice %246 {offsets = [0, 384], sizes = [8, 128], strides = [1, 1]} : vector<8x512xf32> to vector<8x128xf32>
    %256 = math.tanh %255 : vector<8x128xf32>
    %257 = vector.extract_strided_slice %254 {offsets = [0, 0], sizes = [8, 128], strides = [1, 1]} : vector<8x384xf32> to vector<8x128xf32>
    %258 = vector.extract_strided_slice %254 {offsets = [0, 128], sizes = [8, 128], strides = [1, 1]} : vector<8x384xf32> to vector<8x128xf32>
    %259 = vector.extract_strided_slice %254 {offsets = [0, 256], sizes = [8, 128], strides = [1, 1]} : vector<8x384xf32> to vector<8x128xf32>
    %260 = arith.mulf %258, %236 : vector<8x128xf32>
    %261 = arith.mulf %257, %256 : vector<8x128xf32>
    %262 = arith.addf %260, %261 : vector<8x128xf32>
    %263 = math.tanh %262 : vector<8x128xf32>
    %264 = arith.mulf %259, %263 : vector<8x128xf32>
    %c10_i32 = arith.constant 10 : i32
    %265 = arith.index_cast %c10_i32 : i32 to index
    %c0_84 = arith.constant 0 : index
    %c0_85 = arith.constant 0 : index
    %266 = vector.load %arg2[%265, %c0_84, %c0_85] : memref<12x8x512xbf16, #tpu.memory_space<vmem>>, vector<1x8x512xbf16>
    %267 = vector.shape_cast %266 : vector<1x8x512xbf16> to vector<8x512xbf16>
    %268 = arith.extf %267 : vector<8x512xbf16> to vector<8x512xf32>
    %269 = arith.truncf %264 : vector<8x128xf32> to vector<8x128xbf16>
    %c0_86 = arith.constant 0 : index
    %c0_87 = arith.constant 0 : index
    %270 = vector.load %arg3[%c0_86, %c0_87] : memref<128x512xbf16, #tpu.memory_space<vmem>>, vector<128x512xbf16>
    %cst_88 = arith.constant dense<0.000000e+00> : vector<8x512xf32>
    %271 = tpu.matmul %269, %270, %cst_88 {dimension_numbers = #tpu.dot_dimension_numbers<[1], [0], [0], [1], [0, 0, 1, 1], [], []>} : vector<8x128xbf16>, vector<128x512xbf16>, vector<8x512xf32> -> vector<8x512xf32>
    %272 = arith.addf %268, %271 : vector<8x512xf32>
    %273 = vector.extract_strided_slice %272 {offsets = [0, 0], sizes = [8, 384], strides = [1, 1]} : vector<8x512xf32> to vector<8x384xf32>
    %cst_89 = arith.constant 5.000000e-01 : f32
    %274 = vector.broadcast %cst_89 : f32 to vector<8x384xf32>
    %275 = arith.mulf %274, %273 : vector<8x384xf32>
    %276 = math.tanh %275 : vector<8x384xf32>
    %cst_90 = arith.constant 5.000000e-01 : f32
    %277 = vector.broadcast %cst_90 : f32 to vector<8x384xf32>
    %278 = arith.mulf %277, %276 : vector<8x384xf32>
    %cst_91 = arith.constant 5.000000e-01 : f32
    %279 = vector.broadcast %cst_91 : f32 to vector<8x384xf32>
    %280 = arith.addf %278, %279 : vector<8x384xf32>
    %281 = vector.extract_strided_slice %272 {offsets = [0, 384], sizes = [8, 128], strides = [1, 1]} : vector<8x512xf32> to vector<8x128xf32>
    %282 = math.tanh %281 : vector<8x128xf32>
    %283 = vector.extract_strided_slice %280 {offsets = [0, 0], sizes = [8, 128], strides = [1, 1]} : vector<8x384xf32> to vector<8x128xf32>
    %284 = vector.extract_strided_slice %280 {offsets = [0, 128], sizes = [8, 128], strides = [1, 1]} : vector<8x384xf32> to vector<8x128xf32>
    %285 = vector.extract_strided_slice %280 {offsets = [0, 256], sizes = [8, 128], strides = [1, 1]} : vector<8x384xf32> to vector<8x128xf32>
    %286 = arith.mulf %284, %262 : vector<8x128xf32>
    %287 = arith.mulf %283, %282 : vector<8x128xf32>
    %288 = arith.addf %286, %287 : vector<8x128xf32>
    %289 = math.tanh %288 : vector<8x128xf32>
    %290 = arith.mulf %285, %289 : vector<8x128xf32>
    %c11_i32 = arith.constant 11 : i32
    %291 = arith.index_cast %c11_i32 : i32 to index
    %c0_92 = arith.constant 0 : index
    %c0_93 = arith.constant 0 : index
    %292 = vector.load %arg2[%291, %c0_92, %c0_93] : memref<12x8x512xbf16, #tpu.memory_space<vmem>>, vector<1x8x512xbf16>
    %293 = vector.shape_cast %292 : vector<1x8x512xbf16> to vector<8x512xbf16>
    %294 = arith.extf %293 : vector<8x512xbf16> to vector<8x512xf32>
    %295 = arith.truncf %290 : vector<8x128xf32> to vector<8x128xbf16>
    %c0_94 = arith.constant 0 : index
    %c0_95 = arith.constant 0 : index
    %296 = vector.load %arg3[%c0_94, %c0_95] : memref<128x512xbf16, #tpu.memory_space<vmem>>, vector<128x512xbf16>
    %cst_96 = arith.constant dense<0.000000e+00> : vector<8x512xf32>
    %297 = tpu.matmul %295, %296, %cst_96 {dimension_numbers = #tpu.dot_dimension_numbers<[1], [0], [0], [1], [0, 0, 1, 1], [], []>} : vector<8x128xbf16>, vector<128x512xbf16>, vector<8x512xf32> -> vector<8x512xf32>
    %298 = arith.addf %294, %297 : vector<8x512xf32>
    %299 = vector.extract_strided_slice %298 {offsets = [0, 0], sizes = [8, 384], strides = [1, 1]} : vector<8x512xf32> to vector<8x384xf32>
    %cst_97 = arith.constant 5.000000e-01 : f32
    %300 = vector.broadcast %cst_97 : f32 to vector<8x384xf32>
    %301 = arith.mulf %300, %299 : vector<8x384xf32>
    %302 = math.tanh %301 : vector<8x384xf32>
    %cst_98 = arith.constant 5.000000e-01 : f32
    %303 = vector.broadcast %cst_98 : f32 to vector<8x384xf32>
    %304 = arith.mulf %303, %302 : vector<8x384xf32>
    %cst_99 = arith.constant 5.000000e-01 : f32
    %305 = vector.broadcast %cst_99 : f32 to vector<8x384xf32>
    %306 = arith.addf %304, %305 : vector<8x384xf32>
    %307 = vector.extract_strided_slice %298 {offsets = [0, 384], sizes = [8, 128], strides = [1, 1]} : vector<8x512xf32> to vector<8x128xf32>
    %308 = math.tanh %307 : vector<8x128xf32>
    %309 = vector.extract_strided_slice %306 {offsets = [0, 0], sizes = [8, 128], strides = [1, 1]} : vector<8x384xf32> to vector<8x128xf32>
    %310 = vector.extract_strided_slice %306 {offsets = [0, 128], sizes = [8, 128], strides = [1, 1]} : vector<8x384xf32> to vector<8x128xf32>
    %311 = vector.extract_strided_slice %306 {offsets = [0, 256], sizes = [8, 128], strides = [1, 1]} : vector<8x384xf32> to vector<8x128xf32>
    %312 = arith.mulf %310, %288 : vector<8x128xf32>
    %313 = arith.mulf %309, %308 : vector<8x128xf32>
    %314 = arith.addf %312, %313 : vector<8x128xf32>
    %315 = math.tanh %314 : vector<8x128xf32>
    %316 = arith.mulf %311, %315 : vector<8x128xf32>
    %c12_i32 = arith.constant 12 : i32
    %c0_100 = arith.constant 0 : index
    %c0_101 = arith.constant 0 : index
    %317 = vector.load %arg4[%c0_100, %c0_101] : memref<8x128xf32, #tpu.memory_space<vmem>>, vector<8x128xf32>
    tpu.vector_store %arg4[%c0_100, %c0_101], %316 {strides = array<i32>} : memref<8x128xf32, #tpu.memory_space<vmem>>, vector<8x128xf32>,
    %c0_102 = arith.constant 0 : index
    %c0_103 = arith.constant 0 : index
    %318 = vector.load %arg5[%c0_102, %c0_103] : memref<8x128xf32, #tpu.memory_space<vmem>>, vector<8x128xf32>
    tpu.vector_store %arg5[%c0_102, %c0_103], %314 {strides = array<i32>} : memref<8x128xf32, #tpu.memory_space<vmem>>, vector<8x128xf32>,
    return
  }
  func.func @transform_0(%arg0: i32, %arg1: i32) -> (i32, i32, i32) {
    %c0_i32 = arith.constant 0 : i32
    %c0_i32_0 = arith.constant 0 : i32
    return %arg1, %arg0, %c0_i32 : i32, i32, i32
  }
  func.func @transform_1(%arg0: i32, %arg1: i32) -> (i32, i32) {
    %c0_i32 = arith.constant 0 : i32
    %c0_i32_0 = arith.constant 0 : i32
    %c0_i32_1 = arith.constant 0 : i32
    return %c0_i32, %c0_i32_0 : i32, i32
  }
  func.func @transform_2(%arg0: i32, %arg1: i32) -> (i32, i32) {
    %c0_i32 = arith.constant 0 : i32
    %c0_i32_0 = arith.constant 0 : i32
    return %arg0, %c0_i32 : i32, i32
  }
}

</mosaic_0001>

<bundles_post_ra>
// kernel: tpu_custom_call.1
= control target key start
LH: loop header
LB: loop body
LE: loop exit
PB: predicated region body
PF: predicated region fallthrough
CT: control target
= control target key end

     0   :  { %7 = vsyncpa [#allocation4], 0  ;;  %s2514_s0 = inlined_call_operand.hbm [shape: bf16[12,8,512], index: 0, kind: input, shape index: {}]   ;;  %s2515_s1 = inlined_call_operand.hbm [shape: bf16[128,512], index: 1, kind: input, shape index: {}]   ;;  %s2516_s2 = inlined_call_operand.hbm [shape: f32[8,128], index: 2, kind: output, shape index: {}]  }
   0x1   :  { %8 = vsyncpa [#allocation7], 0 }
   0x2   :  { %9 = vsyncpa [#allocation5], 0  ;;  %s1907_s9 = smov [#allocation3]  }
   0x3   :  { %s15_s10 = sshll.u32 %s1907_s9, 4  ;;  %s16_s10 = int_to_ptr.vmem [resolvable:$true] %s15_s10 }
   0x4   :  { %s1849_s11 = scalar_lea.vmem %s16_s10, 3072  ;;  %p1854_p1 = scmp.lt.s32.totalorder %s16_s10, %s16_s10 }
   0x5   :  { %p1850_p0 = scmp.ne.s32.totalorder %s16_s10, %s1849_s11  ;;  %p1855_p2 = scmp.lt.s32.totalorder %s1849_s11, %s1849_s11 }
   0x7   :  { %p1856_p3 = por %p1855_p2, %p1854_p1 }
   0x9   :  { %p1857_p4 = pnand %p1856_p3, %p1850_p0 }
   0xb   :  { %1860 = shalt.err (!%p1857_p4)
}
   0xc   :  { %s1908_s12 = smov 256   ;;  %s1909_s13 = smov 16  }
   0xd   :  { %21 = dma.hbm_to_vmem [thread:$0]  %s2514_s0, 3072, %s16_s10, [#allocation4], %s1908_s12, %s1908_s12, %s1909_s13  }
   0xe   :  { %s1910_s16 = smov [#allocation6]  }
   0xf   :  { %s27_s17 = sshll.u32 %s1910_s16, 4  ;;  %s28_s17 = int_to_ptr.vmem [resolvable:$true] %s27_s17 }
  0x10   :  { %s1869_s18 = scalar_lea.vmem %s28_s17, 4096  ;;  %p1874_p6 = scmp.lt.s32.totalorder %s28_s17, %s28_s17 }
  0x11   :  { %p1870_p5 = scmp.ne.s32.totalorder %s28_s17, %s1869_s18  ;;  %p1875_p7 = scmp.lt.s32.totalorder %s1869_s18, %s1869_s18 }
  0x13   :  { %p1876_p8 = por %p1875_p7, %p1874_p6 }
  0x15   :  { %p1877_p9 = pnand %p1876_p8, %p1870_p5 }
  0x17   :  { %1880 = shalt.err (!%p1877_p9)
}
  0x18   :  { %33 = dma.hbm_to_vmem [thread:$0]  %s2515_s1, 4096, %s28_s17, [#allocation7], %s1908_s12, %s1908_s12, %s1909_s13  }
  0x19   :  { %1901 = dma.done.wait [#allocation4], 3072  }
  0x1a   :  { %1902 = vsyncadd [#allocation4], 4294964224 }
  0x1b   :  { %1903 = dma.done.wait [#allocation7], 4096  }
  0x1c   :  { %1904 = vsyncadd [#allocation7], 4294963200  ;;  %v1911_v0 = vmov 0   ;;  %v1937_v1 = vld [vmem:[#allocation6 + $0xe4] ss:$16 sps:$4 sm:$0xff]   ;;  %v1912_v33 = vmov 0.0|0.0  }
  0x1d   :  { %280 = vmatprep.mubr.bf16.mxu0 %v1911_v0  ;;  %321 = vmatprep.mubr.bf16.mxu1 %v1911_v0  ;;  %v1939_v2 = vld [vmem:[#allocation6 + $0xec] ss:$16 sps:$4 sm:$0xff]   ;;  %v1942_v3 = vld [vmem:[#allocation6 + $0xe0] ss:$16 sps:$4 sm:$0xff]   ;;  %v1944_v4 = vld [vmem:[#allocation6 + $0xe8] ss:$16 sps:$4 sm:$0xff]  }
  0x1e   :  { %248 = vmatprep.subr.bf16.mxu0 %v1937_v1  ;;  %289 = vmatprep.subr.bf16.mxu1 %v1939_v2  ;;  %v1947_v5 = vld [vmem:[#allocation6 + $0xc4] ss:$16 sps:$4 sm:$0xff]   ;;  %v1951_v6 = vld [vmem:[#allocation6 + $0xcc] ss:$16 sps:$4 sm:$0xff]   ;;  %v1953_v7 = vld [vmem:[#allocation6 + $0xc0] ss:$16 sps:$4 sm:$0xff]  }
  0x1f   :  { %249 = vmatpush1.bf16.msra.mxu0 %v1942_v3  ;;  %290 = vmatpush1.bf16.msra.mxu1 %v1944_v4  ;;  %v1956_v8 = vld [vmem:[#allocation6 + $0xc8] ss:$16 sps:$4 sm:$0xff]   ;;  %v1959_v9 = vld [vmem:[#allocation6 + $0xa4] ss:$16 sps:$4 sm:$0xff]   ;;  %v1961_v10 = vld [vmem:[#allocation6 + $0xac] ss:$16 sps:$4 sm:$0xff]  }
  0x20   :  { %250 = vmatprep.subr.bf16.mxu0 %v1947_v5  ;;  %291 = vmatprep.subr.bf16.mxu1 %v1951_v6  ;;  %v1963_v11 = vld [vmem:[#allocation6 + $0xa0] ss:$16 sps:$4 sm:$0xff]   ;;  %v1965_v12 = vld [vmem:[#allocation6 + $0xa8] ss:$16 sps:$4 sm:$0xff]   ;;  %v1969_v13 = vld [vmem:[#allocation6 + $0x84] ss:$16 sps:$4 sm:$0xff]  }
  0x21   :  { %v1973_v14 = vld [vmem:[#allocation6 + $0x8c] ss:$16 sps:$4 sm:$0xff]   ;;  %v1975_v15 = vld [vmem:[#allocation6 + $0x80] ss:$16 sps:$4 sm:$0xff]   ;;  %v1979_v16 = vld [vmem:[#allocation6 + $0x88] ss:$16 sps:$4 sm:$0xff]  }
  0x22   :  { %v1981_v17 = vld [vmem:[#allocation6 + $0x64] ss:$16 sps:$4 sm:$0xff]   ;;  %v1985_v18 = vld [vmem:[#allocation6 + $0x6c] ss:$16 sps:$4 sm:$0xff]   ;;  %v1987_v19 = vld [vmem:[#allocation6 + $0x60] ss:$16 sps:$4 sm:$0xff]  }
  0x23   :  { %251 = vmatpush1.bf16.msra.mxu0 %v1953_v7  ;;  %292 = vmatpush1.bf16.msra.mxu1 %v1956_v8  ;;  %v1989_v20 = vld [vmem:[#allocation6 + $0x68] ss:$16 sps:$4 sm:$0xff]   ;;  %v1993_v21 = vld [vmem:[#allocation6 + $0x44] ss:$16 sps:$4 sm:$0xff]   ;;  %v1997_v22 = vld [vmem:[#allocation6 + $0x4c] ss:$16 sps:$4 sm:$0xff]  }
  0x24   :  { %252 = vmatprep.subr.bf16.mxu0 %v1959_v9  ;;  %293 = vmatprep.subr.bf16.mxu1 %v1961_v10  ;;  %v2001_v23 = vld [vmem:[#allocation6 + $0x40] ss:$16 sps:$4 sm:$0xff]   ;;  %v2003_v24 = vld [vmem:[#allocation6 + $0x48] ss:$16 sps:$4 sm:$0xff]   ;;  %v2007_v25 = vld [vmem:[#allocation6 + $0x24] ss:$16 sps:$4 sm:$0xff]  }
  0x25   :  { %v2009_v26 = vld [vmem:[#allocation6 + $0x2c] ss:$16 sps:$4 sm:$0xff]   ;;  %v2013_v27 = vld [vmem:[#allocation6 + $0x20] ss:$16 sps:$4 sm:$0xff]   ;;  %v2015_v28 = vld [vmem:[#allocation6 + $0x28] ss:$16 sps:$4 sm:$0xff]  }
  0x26   :  { %v2019_v29 = vld [vmem:[#allocation6 + $0x4] ss:$16 sps:$4 sm:$0xff]   ;;  %v2021_v30 = vld [vmem:[#allocation6 + $0xc] ss:$16 sps:$4 sm:$0xff]   ;;  %v2025_v31 = vld [vmem:[#allocation6] ss:$16 sps:$4 sm:$0xff]  }
  0x27   :  { %253 = vmatpush1.bf16.msra.mxu0 %v1963_v11  ;;  %294 = vmatpush1.bf16.msra.mxu1 %v1965_v12  ;;  %v2027_v32 = vld [vmem:[#allocation6 + $0x8] ss:$16 sps:$4 sm:$0xff]   ;;  %v49_v34 = vld [vmem:[#allocation3] sm:$0xff]  ;;  %s1913_s0 = smov [#allocation8]  }
  0x28   :  { %254 = vmatprep.subr.bf16.mxu0 %v1969_v13  ;;  %295 = vmatprep.subr.bf16.mxu1 %v1973_v14  ;;  %v51_v35 = vunpack.c.l.bf16 %v49_v34  ;;  %v50_v36 = vld [vmem:[#allocation3 + $0x8] sm:$0xff]  ;;  %v52_v37 = vunpack.c.h.bf16 %v49_v34  ;;  %s1592_s1 = sshll.u32 %s1913_s0, 4  ;;  %s1593_s1 = int_to_ptr.vmem [resolvable:$true] %s1592_s1 }
  0x29   :  { %v54_v41 = vunpack.c.h.bf16 %v50_v36  ;;  %v53_v52 = vunpack.c.l.bf16 %v50_v36  ;;  %s1881_s21 = scalar_lea.vmem %s1593_s1, 128  ;;  %p1886_p11 = scmp.lt.s32.totalorder %s1593_s1, %s1593_s1 }
  0x2a   :  { %p1882_p10 = scmp.ne.s32.totalorder %s1593_s1, %s1881_s21  ;;  %p1887_p12 = scmp.lt.s32.totalorder %s1881_s21, %s1881_s21 }
  0x2b   :  { %255 = vmatpush1.bf16.msra.mxu0 %v1975_v15  ;;  %296 = vmatpush1.bf16.msra.mxu1 %v1979_v16 }
  0x2c   :  { %256 = vmatprep.subr.bf16.mxu0 %v1981_v17  ;;  %297 = vmatprep.subr.bf16.mxu1 %v1985_v18  ;;  %p1888_p13 = por %p1887_p12, %p1886_p11 }
  0x2e   :  { %p1889_p0 = pnand %p1888_p13, %p1882_p10 }
  0x2f   :  { %257 = vmatpush1.bf16.msra.mxu0 %v1987_v19  ;;  %298 = vmatpush1.bf16.msra.mxu1 %v1989_v20 }
  0x30   :  { %258 = vmatprep.subr.bf16.mxu0 %v1993_v21  ;;  %299 = vmatprep.subr.bf16.mxu1 %v1997_v22 }
  0x33   :  { %259 = vmatpush1.bf16.msra.mxu0 %v2001_v23  ;;  %300 = vmatpush1.bf16.msra.mxu1 %v2003_v24 }
  0x34   :  { %260 = vmatprep.subr.bf16.mxu0 %v2007_v25  ;;  %301 = vmatprep.subr.bf16.mxu1 %v2009_v26 }
  0x37   :  { %261 = vmatpush1.bf16.msra.mxu0 %v2013_v27  ;;  %302 = vmatpush1.bf16.msra.mxu1 %v2015_v28 }
  0x38   :  { %262 = vmatprep.subr.bf16.mxu0 %v2019_v29  ;;  %303 = vmatprep.subr.bf16.mxu1 %v2021_v30 }
  0x3b   :  { %263 = vmatpush1.bf16.msra.mxu0 %v2025_v31  ;;  %304 = vmatpush1.bf16.msra.mxu1 %v2027_v32 }
  0x3c   :  { %360 = vmatprep.subr.bf16.mxu0 %v1937_v1  ;;  %401 = vmatprep.subr.bf16.mxu1 %v1939_v2 }
  0x3e   :  { %281 = vmatmul.mubr.bf16.vlgmr.msra.gmra.mxu0 %v1912_v33  ;;  %322 = vmatmul.mubr.bf16.vlgmr.msra.gmra.mxu1 %v1912_v33 }
  0x3f   :  { %361 = vmatpush1.bf16.msra.mxu0 %v1942_v3  ;;  %402 = vmatpush1.bf16.msra.mxu1 %v1944_v4 }
  0x40   :  { %362 = vmatprep.subr.bf16.mxu0 %v1947_v5  ;;  %403 = vmatprep.subr.bf16.mxu1 %v1951_v6 }
  0x41   :  { %392 = vmatprep.mubr.bf16.mxu0 %v1911_v0  ;;  %433 = vmatprep.mubr.bf16.mxu1 %v1911_v0 }
  0x43   :  { %363 = vmatpush1.bf16.msra.mxu0 %v1953_v7  ;;  %404 = vmatpush1.bf16.msra.mxu1 %v1956_v8 }
  0x44   :  { %364 = vmatprep.subr.bf16.mxu0 %v1959_v9  ;;  %405 = vmatprep.subr.bf16.mxu1 %v1961_v10 }
  0x47   :  { %365 = vmatpush1.bf16.msra.mxu0 %v1963_v11  ;;  %406 = vmatpush1.bf16.msra.mxu1 %v1965_v12 }
  0x48   :  { %366 = vmatprep.subr.bf16.mxu0 %v1969_v13  ;;  %407 = vmatprep.subr.bf16.mxu1 %v1973_v14 }
  0x4b   :  { %367 = vmatpush1.bf16.msra.mxu0 %v1975_v15  ;;  %408 = vmatpush1.bf16.msra.mxu1 %v1979_v16 }
  0x4c   :  { %368 = vmatprep.subr.bf16.mxu0 %v1981_v17  ;;  %409 = vmatprep.subr.bf16.mxu1 %v1985_v18 }
  0x4f   :  { %369 = vmatpush1.bf16.msra.mxu0 %v1987_v19  ;;  %410 = vmatpush1.bf16.msra.mxu1 %v1989_v20 }
  0x50   :  { %370 = vmatprep.subr.bf16.mxu0 %v1993_v21  ;;  %411 = vmatprep.subr.bf16.mxu1 %v1997_v22 }
  0x53   :  { %371 = vmatpush1.bf16.msra.mxu0 %v2001_v23  ;;  %412 = vmatpush1.bf16.msra.mxu1 %v2003_v24 }
  0x54   :  { %372 = vmatprep.subr.bf16.mxu0 %v2007_v25  ;;  %413 = vmatprep.subr.bf16.mxu1 %v2009_v26 }
  0x57   :  { %373 = vmatpush1.bf16.msra.mxu0 %v2013_v27  ;;  %414 = vmatpush1.bf16.msra.mxu1 %v2015_v28 }
  0x58   :  { %374 = vmatprep.subr.bf16.mxu0 %v2019_v29  ;;  %415 = vmatprep.subr.bf16.mxu1 %v2021_v30 }
  0x5b   :  { %375 = vmatpush1.bf16.msra.mxu0 %v2025_v31  ;;  %416 = vmatpush1.bf16.msra.mxu1 %v2027_v32 }
  0x5c   :  { %472 = vmatprep.subr.bf16.mxu0 %v1937_v1  ;;  %513 = vmatprep.subr.bf16.mxu1 %v1939_v2 }
  0xfe   :  { %v282_v38 = vpop.f32.mrf.mxu0  ;;  %v323_v39 = vpop.f32.mrf.mxu1 }
  0xff   :  { %v330_v40 = vadd.f32 %v282_v38, %v51_v35  ;;  %v332_v53 = vadd.f32 %v323_v39, %v53_v52 }
 0x100   :  { %v284_v42 = vpop.f32.mrf.mxu0  ;;  %v325_v43 = vpop.f32.mrf.mxu1 }
 0x101   :  { %v334_v44 = vmul.f32 0.5, %v330_v40  ;;  %v331_v45 = vadd.f32 %v284_v42, %v52_v37  ;;  %v333_v49 = vadd.f32 %v325_v43, %v54_v41  ;;  %v336_v54 = vmul.f32 0.5, %v332_v53  ;;  %v353_v40 = vld [vmem:[#allocation3 + $0x10] sm:$0xff] }
 0x102   :  { %v286_v46 = vpop.f32.mrf.mxu0  ;;  %v327_v47 = vpop.f32.mrf.mxu1  ;;  %v355_v41 = vunpack.c.l.bf16 %v353_v40  ;;  %v356_v42 = vunpack.c.h.bf16 %v353_v40 }
 0x103   :  { %1689 = vtanh.f32 %v334_v44  ;;  %v335_v48 = vmul.f32 0.5, %v331_v45  ;;  %v354_v46 = vld [vmem:[#allocation3 + $0x18] sm:$0xff] }
 0x104   :  { %v287_v50 = vpop.f32.mrf.mxu0  ;;  %v328_v51 = vpop.f32.mrf.mxu1 }
 0x105   :  { %1691 = vtanh.f32 %v335_v48  ;;  %v358_v51 = vunpack.c.h.bf16 %v354_v46 }
 0x106   :  { %1693 = vtanh.f32 %v333_v49 }
 0x107   :  { %1695 = vtanh.f32 %v336_v54 }
 0x110   :  { %v1690_v55 = vpop.eup %1689 }
 0x111   :  { %v340_v56 = vmul.f32 0.5, %v1690_v55 }
 0x112   :  { %v1692_v57 = vpop.eup %1691 }
 0x113   :  { %v343_v58 = vadd.f32 0.5, %v340_v56  ;;  %v341_v59 = vmul.f32 0.5, %v1692_v57  ;;  %v1694_v60 = vpop.eup %1693 }
 0x114   :  { %v1696_v34 = vpop.eup %1695 }
 0x115   :  { %v344_v61 = vadd.f32 0.5, %v341_v59  ;;  %v348_v63 = vmul.f32 %v1694_v60, %v343_v58  ;;  %v342_v35 = vmul.f32 0.5, %v1696_v34  ;;  %v357_v58 = vunpack.c.l.bf16 %v354_v46 }
 0x117   :  { %v347_v62 = vmul.f32 0.0, %v344_v61  ;;  %v345_v36 = vadd.f32 0.5, %v342_v35 }
 0x119   :  { %v2069_v33 = vadd.f32 %v348_v63, %v347_v62 }
 0x11b   :  { %1697 = vtanh.f32 %v2069_v33 }
 0x128   :  { %v1698_v37 = vpop.eup %1697 }
 0x129   :  { %v351_v38 = vmul.f32 %v1698_v37, %v345_v36 }
 0x12b   :  { %v359_v39 = vpack.c.bf16 %v351_v38, %v351_v38 }
 0x12d   :  { %393 = vmatmul.mubr.bf16.vlgmr.msra.gmra.mxu0 %v359_v39  ;;  %434 = vmatmul.mubr.bf16.vlgmr.msra.gmra.mxu1 %v359_v39 }
 0x12e   :  { %473 = vmatpush1.bf16.msra.mxu0 %v1942_v3  ;;  %514 = vmatpush1.bf16.msra.mxu1 %v1944_v4 }
 0x12f   :  { %474 = vmatprep.subr.bf16.mxu0 %v1947_v5  ;;  %515 = vmatprep.subr.bf16.mxu1 %v1951_v6 }
 0x130   :  { %504 = vmatprep.mubr.bf16.mxu0 %v1911_v0  ;;  %545 = vmatprep.mubr.bf16.mxu1 %v1911_v0 }
 0x132   :  { %475 = vmatpush1.bf16.msra.mxu0 %v1953_v7  ;;  %516 = vmatpush1.bf16.msra.mxu1 %v1956_v8 }
 0x133   :  { %476 = vmatprep.subr.bf16.mxu0 %v1959_v9  ;;  %517 = vmatprep.subr.bf16.mxu1 %v1961_v10 }
 0x136   :  { %477 = vmatpush1.bf16.msra.mxu0 %v1963_v11  ;;  %518 = vmatpush1.bf16.msra.mxu1 %v1965_v12 }
 0x137   :  { %478 = vmatprep.subr.bf16.mxu0 %v1969_v13  ;;  %519 = vmatprep.subr.bf16.mxu1 %v1973_v14 }
 0x13a   :  { %479 = vmatpush1.bf16.msra.mxu0 %v1975_v15  ;;  %520 = vmatpush1.bf16.msra.mxu1 %v1979_v16 }
 0x13b   :  { %480 = vmatprep.subr.bf16.mxu0 %v1981_v17  ;;  %521 = vmatprep.subr.bf16.mxu1 %v1985_v18 }
 0x13e   :  { %481 = vmatpush1.bf16.msra.mxu0 %v1987_v19  ;;  %522 = vmatpush1.bf16.msra.mxu1 %v1989_v20 }
 0x13f   :  { %482 = vmatprep.subr.bf16.mxu0 %v1993_v21  ;;  %523 = vmatprep.subr.bf16.mxu1 %v1997_v22 }
 0x142   :  { %483 = vmatpush1.bf16.msra.mxu0 %v2001_v23  ;;  %524 = vmatpush1.bf16.msra.mxu1 %v2003_v24 }
 0x143   :  { %484 = vmatprep.subr.bf16.mxu0 %v2007_v25  ;;  %525 = vmatprep.subr.bf16.mxu1 %v2009_v26 }
 0x146   :  { %485 = vmatpush1.bf16.msra.mxu0 %v2013_v27  ;;  %526 = vmatpush1.bf16.msra.mxu1 %v2015_v28 }
 0x147   :  { %486 = vmatprep.subr.bf16.mxu0 %v2019_v29  ;;  %527 = vmatprep.subr.bf16.mxu1 %v2021_v30 }
 0x14a   :  { %487 = vmatpush1.bf16.msra.mxu0 %v2025_v31  ;;  %528 = vmatpush1.bf16.msra.mxu1 %v2027_v32 }
 0x14b   :  { %584 = vmatprep.subr.bf16.mxu0 %v1937_v1  ;;  %625 = vmatprep.subr.bf16.mxu1 %v1939_v2 }
 0x1ed   :  { %v394_v43 = vpop.f32.mrf.mxu0  ;;  %v435_v44 = vpop.f32.mrf.mxu1 }
 0x1ee   :  { %v442_v45 = vadd.f32 %v394_v43, %v355_v41  ;;  %v444_v59 = vadd.f32 %v435_v44, %v357_v58 }
 0x1ef   :  { %v396_v47 = vpop.f32.mrf.mxu0  ;;  %v437_v48 = vpop.f32.mrf.mxu1 }
 0x1f0   :  { %v446_v49 = vmul.f32 0.5, %v442_v45  ;;  %v443_v50 = vadd.f32 %v396_v47, %v356_v42  ;;  %v445_v57 = vadd.f32 %v437_v48, %v358_v51  ;;  %v448_v60 = vmul.f32 0.5, %v444_v59 }
 0x1f1   :  { %v398_v52 = vpop.f32.mrf.mxu0  ;;  %v439_v53 = vpop.f32.mrf.mxu1 }
 0x1f2   :  { %1699 = vtanh.f32 %v446_v49  ;;  %v447_v54 = vmul.f32 0.5, %v443_v50  ;;  %v466_v52 = vld [vmem:[#allocation3 + $0x28] sm:$0xff] }
 0x1f3   :  { %v399_v55 = vpop.f32.mrf.mxu0  ;;  %v440_v56 = vpop.f32.mrf.mxu1 }
 0x1f4   :  { %1701 = vtanh.f32 %v447_v54 }
 0x1f5   :  { %1703 = vtanh.f32 %v445_v57  ;;  %v470_v57 = vunpack.c.h.bf16 %v466_v52 }
 0x1f6   :  { %1705 = vtanh.f32 %v448_v60 }
 0x1ff   :  { %v1700_v61 = vpop.eup %1699 }
 0x200   :  { %v452_v62 = vmul.f32 0.5, %v1700_v61 }
 0x201   :  { %v1702_v63 = vpop.eup %1701 }
 0x202   :  { %v455_v34 = vadd.f32 0.5, %v452_v62  ;;  %v453_v35 = vmul.f32 0.5, %v1702_v63  ;;  %v1704_v37 = vpop.eup %1703 }
 0x203   :  { %v1706_v41 = vpop.eup %1705 }
 0x204   :  { %v456_v36 = vadd.f32 0.5, %v453_v35  ;;  %v460_v39 = vmul.f32 %v1704_v37, %v455_v34  ;;  %v454_v42 = vmul.f32 0.5, %v1706_v41  ;;  %v469_v34 = vunpack.c.l.bf16 %v466_v52 }
 0x206   :  { %v459_v38 = vmul.f32 %v456_v36, %v2069_v33  ;;  %v457_v43 = vadd.f32 0.5, %v454_v42  ;;  %v465_v33 = vld [vmem:[#allocation3 + $0x20] sm:$0xff] }
 0x207   :  { %v467_v47 = vunpack.c.l.bf16 %v465_v33  ;;  %v468_v48 = vunpack.c.h.bf16 %v465_v33 }
 0x208   :  { %v2107_v40 = vadd.f32 %v460_v39, %v459_v38 }
 0x20a   :  { %1707 = vtanh.f32 %v2107_v40 }
 0x217   :  { %v1708_v44 = vpop.eup %1707 }
 0x218   :  { %v463_v45 = vmul.f32 %v1708_v44, %v457_v43 }
 0x21a   :  { %v471_v46 = vpack.c.bf16 %v463_v45, %v463_v45 }
 0x21c   :  { %505 = vmatmul.mubr.bf16.vlgmr.msra.gmra.mxu0 %v471_v46  ;;  %546 = vmatmul.mubr.bf16.vlgmr.msra.gmra.mxu1 %v471_v46 }
 0x21d   :  { %585 = vmatpush1.bf16.msra.mxu0 %v1942_v3  ;;  %626 = vmatpush1.bf16.msra.mxu1 %v1944_v4 }
 0x21e   :  { %586 = vmatprep.subr.bf16.mxu0 %v1947_v5  ;;  %627 = vmatprep.subr.bf16.mxu1 %v1951_v6 }
 0x21f   :  { %616 = vmatprep.mubr.bf16.mxu0 %v1911_v0  ;;  %657 = vmatprep.mubr.bf16.mxu1 %v1911_v0 }
 0x221   :  { %587 = vmatpush1.bf16.msra.mxu0 %v1953_v7  ;;  %628 = vmatpush1.bf16.msra.mxu1 %v1956_v8 }
 0x222   :  { %588 = vmatprep.subr.bf16.mxu0 %v1959_v9  ;;  %629 = vmatprep.subr.bf16.mxu1 %v1961_v10 }
 0x225   :  { %589 = vmatpush1.bf16.msra.mxu0 %v1963_v11  ;;  %630 = vmatpush1.bf16.msra.mxu1 %v1965_v12 }
 0x226   :  { %590 = vmatprep.subr.bf16.mxu0 %v1969_v13  ;;  %631 = vmatprep.subr.bf16.mxu1 %v1973_v14 }
 0x229   :  { %591 = vmatpush1.bf16.msra.mxu0 %v1975_v15  ;;  %632 = vmatpush1.bf16.msra.mxu1 %v1979_v16 }
 0x22a   :  { %592 = vmatprep.subr.bf16.mxu0 %v1981_v17  ;;  %633 = vmatprep.subr.bf16.mxu1 %v1985_v18 }
 0x22d   :  { %593 = vmatpush1.bf16.msra.mxu0 %v1987_v19  ;;  %634 = vmatpush1.bf16.msra.mxu1 %v1989_v20 }
 0x22e   :  { %594 = vmatprep.subr.bf16.mxu0 %v1993_v21  ;;  %635 = vmatprep.subr.bf16.mxu1 %v1997_v22 }
 0x231   :  { %595 = vmatpush1.bf16.msra.mxu0 %v2001_v23  ;;  %636 = vmatpush1.bf16.msra.mxu1 %v2003_v24 }
 0x232   :  { %596 = vmatprep.subr.bf16.mxu0 %v2007_v25  ;;  %637 = vmatprep.subr.bf16.mxu1 %v2009_v26 }
 0x235   :  { %597 = vmatpush1.bf16.msra.mxu0 %v2013_v27  ;;  %638 = vmatpush1.bf16.msra.mxu1 %v2015_v28 }
 0x236   :  { %598 = vmatprep.subr.bf16.mxu0 %v2019_v29  ;;  %639 = vmatprep.subr.bf16.mxu1 %v2021_v30 }
 0x239   :  { %599 = vmatpush1.bf16.msra.mxu0 %v2025_v31  ;;  %640 = vmatpush1.bf16.msra.mxu1 %v2027_v32 }
 0x23a   :  { %696 = vmatprep.subr.bf16.mxu0 %v1937_v1  ;;  %737 = vmatprep.subr.bf16.mxu1 %v1939_v2 }
 0x2dc   :  { %v506_v49 = vpop.f32.mrf.mxu0  ;;  %v547_v50 = vpop.f32.mrf.mxu1 }
 0x2dd   :  { %v554_v51 = vadd.f32 %v506_v49, %v467_v47  ;;  %v556_v35 = vadd.f32 %v547_v50, %v469_v34 }
 0x2de   :  { %v508_v53 = vpop.f32.mrf.mxu0  ;;  %v549_v54 = vpop.f32.mrf.mxu1 }
 0x2df   :  { %v558_v55 = vmul.f32 0.5, %v554_v51  ;;  %v555_v56 = vadd.f32 %v508_v53, %v468_v48  ;;  %v557_v63 = vadd.f32 %v549_v54, %v470_v57  ;;  %v560_v36 = vmul.f32 0.5, %v556_v35 }
 0x2e0   :  { %v510_v58 = vpop.f32.mrf.mxu0  ;;  %v551_v59 = vpop.f32.mrf.mxu1 }
 0x2e1   :  { %1709 = vtanh.f32 %v558_v55  ;;  %v559_v60 = vmul.f32 0.5, %v555_v56  ;;  %v578_v58 = vld [vmem:[#allocation3 + $0x38] sm:$0xff] }
 0x2e2   :  { %v511_v61 = vpop.f32.mrf.mxu0  ;;  %v552_v62 = vpop.f32.mrf.mxu1 }
 0x2e3   :  { %1711 = vtanh.f32 %v559_v60 }
 0x2e4   :  { %1713 = vtanh.f32 %v557_v63  ;;  %v582_v63 = vunpack.c.h.bf16 %v578_v58 }
 0x2e5   :  { %1715 = vtanh.f32 %v560_v36 }
 0x2ee   :  { %v1710_v37 = vpop.eup %1709 }
 0x2ef   :  { %v564_v38 = vmul.f32 0.5, %v1710_v37 }
 0x2f0   :  { %v1712_v39 = vpop.eup %1711 }
 0x2f1   :  { %v567_v41 = vadd.f32 0.5, %v564_v38  ;;  %v565_v42 = vmul.f32 0.5, %v1712_v39  ;;  %v1714_v44 = vpop.eup %1713 }
 0x2f2   :  { %v1716_v47 = vpop.eup %1715 }
 0x2f3   :  { %v568_v43 = vadd.f32 0.5, %v565_v42  ;;  %v572_v46 = vmul.f32 %v1714_v44, %v567_v41  ;;  %v566_v48 = vmul.f32 0.5, %v1716_v47  ;;  %v581_v41 = vunpack.c.l.bf16 %v578_v58 }
 0x2f5   :  { %v571_v45 = vmul.f32 %v568_v43, %v2107_v40  ;;  %v569_v49 = vadd.f32 0.5, %v566_v48  ;;  %v577_v40 = vld [vmem:[#allocation3 + $0x30] sm:$0xff] }
 0x2f6   :  { %v579_v53 = vunpack.c.l.bf16 %v577_v40  ;;  %v580_v54 = vunpack.c.h.bf16 %v577_v40 }
 0x2f7   :  { %v2145_v33 = vadd.f32 %v572_v46, %v571_v45 }
 0x2f9   :  { %1717 = vtanh.f32 %v2145_v33 }
 0x306   :  { %v1718_v50 = vpop.eup %1717 }
 0x307   :  { %v575_v51 = vmul.f32 %v1718_v50, %v569_v49 }
 0x309   :  { %v583_v52 = vpack.c.bf16 %v575_v51, %v575_v51 }
 0x30b   :  { %617 = vmatmul.mubr.bf16.vlgmr.msra.gmra.mxu0 %v583_v52  ;;  %658 = vmatmul.mubr.bf16.vlgmr.msra.gmra.mxu1 %v583_v52 }
 0x30c   :  { %697 = vmatpush1.bf16.msra.mxu0 %v1942_v3  ;;  %738 = vmatpush1.bf16.msra.mxu1 %v1944_v4 }
 0x30d   :  { %698 = vmatprep.subr.bf16.mxu0 %v1947_v5  ;;  %739 = vmatprep.subr.bf16.mxu1 %v1951_v6 }
 0x30e   :  { %728 = vmatprep.mubr.bf16.mxu0 %v1911_v0  ;;  %769 = vmatprep.mubr.bf16.mxu1 %v1911_v0 }
 0x310   :  { %699 = vmatpush1.bf16.msra.mxu0 %v1953_v7  ;;  %740 = vmatpush1.bf16.msra.mxu1 %v1956_v8 }
 0x311   :  { %700 = vmatprep.subr.bf16.mxu0 %v1959_v9  ;;  %741 = vmatprep.subr.bf16.mxu1 %v1961_v10 }
 0x314   :  { %701 = vmatpush1.bf16.msra.mxu0 %v1963_v11  ;;  %742 = vmatpush1.bf16.msra.mxu1 %v1965_v12 }
 0x315   :  { %702 = vmatprep.subr.bf16.mxu0 %v1969_v13  ;;  %743 = vmatprep.subr.bf16.mxu1 %v1973_v14 }
 0x318   :  { %703 = vmatpush1.bf16.msra.mxu0 %v1975_v15  ;;  %744 = vmatpush1.bf16.msra.mxu1 %v1979_v16 }
 0x319   :  { %704 = vmatprep.subr.bf16.mxu0 %v1981_v17  ;;  %745 = vmatprep.subr.bf16.mxu1 %v1985_v18 }
 0x31c   :  { %705 = vmatpush1.bf16.msra.mxu0 %v1987_v19  ;;  %746 = vmatpush1.bf16.msra.mxu1 %v1989_v20 }
 0x31d   :  { %706 = vmatprep.subr.bf16.mxu0 %v1993_v21  ;;  %747 = vmatprep.subr.bf16.mxu1 %v1997_v22 }
 0x320   :  { %707 = vmatpush1.bf16.msra.mxu0 %v2001_v23  ;;  %748 = vmatpush1.bf16.msra.mxu1 %v2003_v24 }
 0x321   :  { %708 = vmatprep.subr.bf16.mxu0 %v2007_v25  ;;  %749 = vmatprep.subr.bf16.mxu1 %v2009_v26 }
 0x324   :  { %709 = vmatpush1.bf16.msra.mxu0 %v2013_v27  ;;  %750 = vmatpush1.bf16.msra.mxu1 %v2015_v28 }
 0x325   :  { %710 = vmatprep.subr.bf16.mxu0 %v2019_v29  ;;  %751 = vmatprep.subr.bf16.mxu1 %v2021_v30 }
 0x328   :  { %711 = vmatpush1.bf16.msra.mxu0 %v2025_v31  ;;  %752 = vmatpush1.bf16.msra.mxu1 %v2027_v32 }
 0x329   :  { %808 = vmatprep.subr.bf16.mxu0 %v1937_v1  ;;  %849 = vmatprep.subr.bf16.mxu1 %v1939_v2 }
 0x3cb   :  { %v618_v55 = vpop.f32.mrf.mxu0  ;;  %v659_v56 = vpop.f32.mrf.mxu1 }
 0x3cc   :  { %v666_v57 = vadd.f32 %v618_v55, %v579_v53  ;;  %v668_v42 = vadd.f32 %v659_v56, %v581_v41 }
 0x3cd   :  { %v620_v59 = vpop.f32.mrf.mxu0  ;;  %v661_v60 = vpop.f32.mrf.mxu1 }
 0x3ce   :  { %v670_v61 = vmul.f32 0.5, %v666_v57  ;;  %v667_v62 = vadd.f32 %v620_v59, %v580_v54  ;;  %v669_v39 = vadd.f32 %v661_v60, %v582_v63  ;;  %v672_v43 = vmul.f32 0.5, %v668_v42 }
 0x3cf   :  { %v622_v34 = vpop.f32.mrf.mxu0  ;;  %v663_v35 = vpop.f32.mrf.mxu1 }
 0x3d0   :  { %1719 = vtanh.f32 %v670_v61  ;;  %v671_v36 = vmul.f32 0.5, %v667_v62  ;;  %v690_v34 = vld [vmem:[#allocation3 + $0x48] sm:$0xff] }
 0x3d1   :  { %v623_v37 = vpop.f32.mrf.mxu0  ;;  %v664_v38 = vpop.f32.mrf.mxu1 }
 0x3d2   :  { %1721 = vtanh.f32 %v671_v36 }
 0x3d3   :  { %1723 = vtanh.f32 %v669_v39  ;;  %v694_v39 = vunpack.c.h.bf16 %v690_v34 }
 0x3d4   :  { %1725 = vtanh.f32 %v672_v43 }
 0x3dd   :  { %v1720_v44 = vpop.eup %1719 }
 0x3de   :  { %v676_v45 = vmul.f32 0.5, %v1720_v44 }
 0x3df   :  { %v1722_v46 = vpop.eup %1721 }
 0x3e0   :  { %v679_v47 = vadd.f32 0.5, %v676_v45  ;;  %v677_v48 = vmul.f32 0.5, %v1722_v46  ;;  %v1724_v50 = vpop.eup %1723  ;;  %v693_v45 = vunpack.c.l.bf16 %v690_v34 }
 0x3e1   :  { %v1726_v53 = vpop.eup %1725 }
 0x3e2   :  { %v680_v49 = vadd.f32 0.5, %v677_v48  ;;  %v684_v52 = vmul.f32 %v1724_v50, %v679_v47  ;;  %v678_v54 = vmul.f32 0.5, %v1726_v53 }
 0x3e4   :  { %v683_v51 = vmul.f32 %v680_v49, %v2145_v33  ;;  %v681_v55 = vadd.f32 0.5, %v678_v54  ;;  %v689_v33 = vld [vmem:[#allocation3 + $0x40] sm:$0xff] }
 0x3e5   :  { %v691_v59 = vunpack.c.l.bf16 %v689_v33  ;;  %v692_v60 = vunpack.c.h.bf16 %v689_v33 }
 0x3e6   :  { %v2183_v40 = vadd.f32 %v684_v52, %v683_v51 }
 0x3e8   :  { %1727 = vtanh.f32 %v2183_v40 }
 0x3f5   :  { %v1728_v56 = vpop.eup %1727 }
 0x3f6   :  { %v687_v57 = vmul.f32 %v1728_v56, %v681_v55 }
 0x3f8   :  { %v695_v58 = vpack.c.bf16 %v687_v57, %v687_v57 }
 0x3fa   :  { %729 = vmatmul.mubr.bf16.vlgmr.msra.gmra.mxu0 %v695_v58  ;;  %770 = vmatmul.mubr.bf16.vlgmr.msra.gmra.mxu1 %v695_v58 }
 0x3fb   :  { %809 = vmatpush1.bf16.msra.mxu0 %v1942_v3  ;;  %850 = vmatpush1.bf16.msra.mxu1 %v1944_v4 }
 0x3fc   :  { %810 = vmatprep.subr.bf16.mxu0 %v1947_v5  ;;  %851 = vmatprep.subr.bf16.mxu1 %v1951_v6 }
 0x3fd   :  { %840 = vmatprep.mubr.bf16.mxu0 %v1911_v0  ;;  %881 = vmatprep.mubr.bf16.mxu1 %v1911_v0 }
 0x3ff   :  { %811 = vmatpush1.bf16.msra.mxu0 %v1953_v7  ;;  %852 = vmatpush1.bf16.msra.mxu1 %v1956_v8 }
 0x400   :  { %812 = vmatprep.subr.bf16.mxu0 %v1959_v9  ;;  %853 = vmatprep.subr.bf16.mxu1 %v1961_v10 }
 0x403   :  { %813 = vmatpush1.bf16.msra.mxu0 %v1963_v11  ;;  %854 = vmatpush1.bf16.msra.mxu1 %v1965_v12 }
 0x404   :  { %814 = vmatprep.subr.bf16.mxu0 %v1969_v13  ;;  %855 = vmatprep.subr.bf16.mxu1 %v1973_v14 }
 0x407   :  { %815 = vmatpush1.bf16.msra.mxu0 %v1975_v15  ;;  %856 = vmatpush1.bf16.msra.mxu1 %v1979_v16 }
 0x408   :  { %816 = vmatprep.subr.bf16.mxu0 %v1981_v17  ;;  %857 = vmatprep.subr.bf16.mxu1 %v1985_v18 }
 0x40b   :  { %817 = vmatpush1.bf16.msra.mxu0 %v1987_v19  ;;  %858 = vmatpush1.bf16.msra.mxu1 %v1989_v20 }
 0x40c   :  { %818 = vmatprep.subr.bf16.mxu0 %v1993_v21  ;;  %859 = vmatprep.subr.bf16.mxu1 %v1997_v22 }
 0x40f   :  { %819 = vmatpush1.bf16.msra.mxu0 %v2001_v23  ;;  %860 = vmatpush1.bf16.msra.mxu1 %v2003_v24 }
 0x410   :  { %820 = vmatprep.subr.bf16.mxu0 %v2007_v25  ;;  %861 = vmatprep.subr.bf16.mxu1 %v2009_v26 }
 0x413   :  { %821 = vmatpush1.bf16.msra.mxu0 %v2013_v27  ;;  %862 = vmatpush1.bf16.msra.mxu1 %v2015_v28 }
 0x414   :  { %822 = vmatprep.subr.bf16.mxu0 %v2019_v29  ;;  %863 = vmatprep.subr.bf16.mxu1 %v2021_v30 }
 0x417   :  { %823 = vmatpush1.bf16.msra.mxu0 %v2025_v31  ;;  %864 = vmatpush1.bf16.msra.mxu1 %v2027_v32 }
 0x418   :  { %920 = vmatprep.subr.bf16.mxu0 %v1937_v1  ;;  %961 = vmatprep.subr.bf16.mxu1 %v1939_v2 }
 0x4ba   :  { %v730_v61 = vpop.f32.mrf.mxu0  ;;  %v771_v62 = vpop.f32.mrf.mxu1 }
 0x4bb   :  { %v778_v63 = vadd.f32 %v730_v61, %v691_v59  ;;  %v780_v46 = vadd.f32 %v771_v62, %v693_v45  ;;  %v2275_v45 = vld [vmem:[#allocation6 + $0xcc] ss:$16 sps:$4 sm:$0xff]  }
 0x4bc   :  { %v732_v35 = vpop.f32.mrf.mxu0  ;;  %v773_v36 = vpop.f32.mrf.mxu1 }
 0x4bd   :  { %v782_v37 = vmul.f32 0.5, %v778_v63  ;;  %v779_v38 = vadd.f32 %v732_v35, %v692_v60  ;;  %v781_v2 = vadd.f32 %v773_v36, %v694_v39  ;;  %v784_v47 = vmul.f32 0.5, %v780_v46  ;;  %v2280_v46 = vld [vmem:[#allocation6 + $0xc0] ss:$16 sps:$4 sm:$0xff]  }
 0x4be   :  { %v734_v41 = vpop.f32.mrf.mxu0  ;;  %v775_v42 = vpop.f32.mrf.mxu1 }
 0x4bf   :  { %1729 = vtanh.f32 %v782_v37  ;;  %v783_v43 = vmul.f32 0.5, %v779_v38 }
 0x4c0   :  { %v735_v44 = vpop.f32.mrf.mxu0  ;;  %v776_v1 = vpop.f32.mrf.mxu1 }
 0x4c1   :  { %1731 = vtanh.f32 %v783_v43  ;;  %v2266_v44 = vld [vmem:[#allocation6 + $0xe0] ss:$16 sps:$4 sm:$0xff]   ;;  %v2269_v1 = vld [vmem:[#allocation6 + $0xe8] ss:$16 sps:$4 sm:$0xff]  }
 0x4c2   :  { %1733 = vtanh.f32 %v781_v2  ;;  %v2272_v2 = vld [vmem:[#allocation6 + $0xc4] ss:$16 sps:$4 sm:$0xff]  }
 0x4c3   :  { %1735 = vtanh.f32 %v784_v47  ;;  %v2283_v47 = vld [vmem:[#allocation6 + $0xc8] ss:$16 sps:$4 sm:$0xff]  }
 0x4cc   :  { %v1730_v48 = vpop.eup %1729 }
 0x4cd   :  { %v788_v49 = vmul.f32 0.5, %v1730_v48  ;;  %v2286_v48 = vld [vmem:[#allocation6 + $0xa4] ss:$16 sps:$4 sm:$0xff]  }
 0x4ce   :  { %v1732_v50 = vpop.eup %1731 }
 0x4cf   :  { %v791_v51 = vadd.f32 0.5, %v788_v49  ;;  %v789_v52 = vmul.f32 0.5, %v1732_v50  ;;  %v1734_v54 = vpop.eup %1733  ;;  %v2289_v49 = vld [vmem:[#allocation6 + $0xac] ss:$16 sps:$4 sm:$0xff]   ;;  %v2292_v50 = vld [vmem:[#allocation6 + $0xa0] ss:$16 sps:$4 sm:$0xff]  }
 0x4d0   :  { %v1736_v58 = vpop.eup %1735 }
 0x4d1   :  { %v792_v53 = vadd.f32 0.5, %v789_v52  ;;  %v796_v56 = vmul.f32 %v1734_v54, %v791_v51  ;;  %v790_v33 = vmul.f32 0.5, %v1736_v58  ;;  %v2295_v51 = vld [vmem:[#allocation6 + $0xa8] ss:$16 sps:$4 sm:$0xff]   ;;  %v2298_v52 = vld [vmem:[#allocation6 + $0x84] ss:$16 sps:$4 sm:$0xff]  }
 0x4d2   :  { %v2304_v54 = vld [vmem:[#allocation6 + $0x80] ss:$16 sps:$4 sm:$0xff]  }
 0x4d3   :  { %v795_v55 = vmul.f32 %v792_v53, %v2183_v40  ;;  %v793_v59 = vadd.f32 0.5, %v790_v33  ;;  %v2301_v53 = vld [vmem:[#allocation6 + $0x8c] ss:$16 sps:$4 sm:$0xff]   ;;  %v2316_v58 = vld [vmem:[#allocation6 + $0x60] ss:$16 sps:$4 sm:$0xff]  }
 0x4d4   :  { %v2319_v33 = vld [vmem:[#allocation6 + $0x68] ss:$16 sps:$4 sm:$0xff]  }
 0x4d5   :  { %v2221_v57 = vadd.f32 %v796_v56, %v795_v55  ;;  %v2307_v55 = vld [vmem:[#allocation6 + $0x88] ss:$16 sps:$4 sm:$0xff]   ;;  %v2310_v56 = vld [vmem:[#allocation6 + $0x64] ss:$16 sps:$4 sm:$0xff]  }
 0x4d7   :  { %1737 = vtanh.f32 %v2221_v57 }
 0x4e4   :  { %v1738_v60 = vpop.eup %1737 }
 0x4e5   :  { %v799_v61 = vmul.f32 %v1738_v60, %v793_v59  ;;  %v2322_v59 = vld [vmem:[#allocation6 + $0x44] ss:$16 sps:$4 sm:$0xff]   ;;  %v2325_v60 = vld [vmem:[#allocation6 + $0x4c] ss:$16 sps:$4 sm:$0xff]  }
 0x4e7   :  { %v807_v62 = vpack.c.bf16 %v799_v61, %v799_v61  ;;  %v2328_v61 = vld [vmem:[#allocation6 + $0x40] ss:$16 sps:$4 sm:$0xff]  }
 0x4e9   :  { %841 = vmatmul.mubr.bf16.vlgmr.msra.gmra.mxu0 %v807_v62  ;;  %882 = vmatmul.mubr.bf16.vlgmr.msra.gmra.mxu1 %v807_v62  ;;  %v2331_v62 = vld [vmem:[#allocation6 + $0x48] ss:$16 sps:$4 sm:$0xff]  }
 0x4ea   :  { %921 = vmatpush1.bf16.msra.mxu0 %v1942_v3  ;;  %962 = vmatpush1.bf16.msra.mxu1 %v1944_v4  ;;  %v2256_v3 = vld [vmem:[#allocation6 + $0xe4] ss:$16 sps:$4 sm:$0xff]   ;;  %v2259_v4 = vld [vmem:[#allocation6 + $0xec] ss:$16 sps:$4 sm:$0xff]  }
 0x4eb   :  { %922 = vmatprep.subr.bf16.mxu0 %v1947_v5  ;;  %963 = vmatprep.subr.bf16.mxu1 %v1951_v6  ;;  %v801_v5 = vld [vmem:[#allocation3 + $0x50] sm:$0xff] }
 0x4ec   :  { %952 = vmatprep.mubr.bf16.mxu0 %v1911_v0  ;;  %993 = vmatprep.mubr.bf16.mxu1 %v1911_v0  ;;  %v803_v6 = vunpack.c.l.bf16 %v801_v5 }
 0x4ee   :  { %923 = vmatpush1.bf16.msra.mxu0 %v1953_v7  ;;  %964 = vmatpush1.bf16.msra.mxu1 %v1956_v8  ;;  %v804_v7 = vunpack.c.h.bf16 %v801_v5  ;;  %v2334_v5 = vld [vmem:[#allocation6 + $0x24] ss:$16 sps:$4 sm:$0xff]  }
 0x4ef   :  { %924 = vmatprep.subr.bf16.mxu0 %v1959_v9  ;;  %965 = vmatprep.subr.bf16.mxu1 %v1961_v10 }
 0x4f2   :  { %925 = vmatpush1.bf16.msra.mxu0 %v1963_v11  ;;  %966 = vmatpush1.bf16.msra.mxu1 %v1965_v12  ;;  %v802_v11 = vld [vmem:[#allocation3 + $0x58] sm:$0xff] }
 0x4f3   :  { %926 = vmatprep.subr.bf16.mxu0 %v1969_v13  ;;  %967 = vmatprep.subr.bf16.mxu1 %v1973_v14 }
 0x4f6   :  { %927 = vmatpush1.bf16.msra.mxu0 %v1975_v15  ;;  %968 = vmatpush1.bf16.msra.mxu1 %v1979_v16  ;;  %v806_v16 = vunpack.c.h.bf16 %v802_v11 }
 0x4f7   :  { %928 = vmatprep.subr.bf16.mxu0 %v1981_v17  ;;  %969 = vmatprep.subr.bf16.mxu1 %v1985_v18 }
 0x4fa   :  { %929 = vmatpush1.bf16.msra.mxu0 %v1987_v19  ;;  %970 = vmatpush1.bf16.msra.mxu1 %v1989_v20 }
 0x4fb   :  { %930 = vmatprep.subr.bf16.mxu0 %v1993_v21  ;;  %971 = vmatprep.subr.bf16.mxu1 %v1997_v22 }
 0x4fe   :  { %931 = vmatpush1.bf16.msra.mxu0 %v2001_v23  ;;  %972 = vmatpush1.bf16.msra.mxu1 %v2003_v24  ;;  %v805_v23 = vunpack.c.l.bf16 %v802_v11  ;;  %v913_v11 = vld [vmem:[#allocation3 + $0x60] sm:$0xff] }
 0x4ff   :  { %932 = vmatprep.subr.bf16.mxu0 %v2007_v25  ;;  %973 = vmatprep.subr.bf16.mxu1 %v2009_v26 }
 0x502   :  { %933 = vmatpush1.bf16.msra.mxu0 %v2013_v27  ;;  %974 = vmatpush1.bf16.msra.mxu1 %v2015_v28 }
 0x503   :  { %934 = vmatprep.subr.bf16.mxu0 %v2019_v29  ;;  %975 = vmatprep.subr.bf16.mxu1 %v2021_v30 }
 0x506   :  { %935 = vmatpush1.bf16.msra.mxu0 %v2025_v31  ;;  %976 = vmatpush1.bf16.msra.mxu1 %v2027_v32 }
 0x507   :  { %1032 = vmatprep.subr.bf16.mxu0 %v2256_v3  ;;  %1073 = vmatprep.subr.bf16.mxu1 %v2259_v4 }
 0x5a9   :  { %v842_v8 = vpop.f32.mrf.mxu0  ;;  %v883_v9 = vpop.f32.mrf.mxu1 }
 0x5aa   :  { %v890_v10 = vadd.f32 %v842_v8, %v803_v6  ;;  %v892_v24 = vadd.f32 %v883_v9, %v805_v23  ;;  %v2337_v6 = vld [vmem:[#allocation6 + $0x2c] ss:$16 sps:$4 sm:$0xff]   ;;  %v2343_v8 = vld [vmem:[#allocation6 + $0x28] ss:$16 sps:$4 sm:$0xff]   ;;  %v2346_v9 = vld [vmem:[#allocation6 + $0x4] ss:$16 sps:$4 sm:$0xff]  }
 0x5ab   :  { %v844_v12 = vpop.f32.mrf.mxu0  ;;  %v885_v13 = vpop.f32.mrf.mxu1 }
 0x5ac   :  { %v894_v14 = vmul.f32 0.5, %v890_v10  ;;  %v891_v15 = vadd.f32 %v844_v12, %v804_v7  ;;  %v893_v22 = vadd.f32 %v885_v13, %v806_v16  ;;  %v896_v25 = vmul.f32 0.5, %v892_v24  ;;  %v2340_v7 = vld [vmem:[#allocation6 + $0x20] ss:$16 sps:$4 sm:$0xff]   ;;  %v2349_v10 = vld [vmem:[#allocation6 + $0xc] ss:$16 sps:$4 sm:$0xff]  }
 0x5ad   :  { %v846_v17 = vpop.f32.mrf.mxu0  ;;  %v887_v18 = vpop.f32.mrf.mxu1  ;;  %v915_v12 = vunpack.c.l.bf16 %v913_v11  ;;  %v916_v13 = vunpack.c.h.bf16 %v913_v11 }
 0x5ae   :  { %1739 = vtanh.f32 %v894_v14  ;;  %v895_v19 = vmul.f32 0.5, %v891_v15  ;;  %v914_v17 = vld [vmem:[#allocation3 + $0x68] sm:$0xff] }
 0x5af   :  { %v847_v20 = vpop.f32.mrf.mxu0  ;;  %v888_v21 = vpop.f32.mrf.mxu1 }
 0x5b0   :  { %1741 = vtanh.f32 %v895_v19 }
 0x5b1   :  { %1743 = vtanh.f32 %v893_v22  ;;  %v918_v22 = vunpack.c.h.bf16 %v914_v17 }
 0x5b2   :  { %1745 = vtanh.f32 %v896_v25 }
 0x5bb   :  { %v1740_v26 = vpop.eup %1739 }
 0x5bc   :  { %v900_v27 = vmul.f32 0.5, %v1740_v26 }
 0x5bd   :  { %v1742_v28 = vpop.eup %1741 }
 0x5be   :  { %v903_v29 = vadd.f32 0.5, %v900_v27  ;;  %v901_v30 = vmul.f32 0.5, %v1742_v28  ;;  %v1744_v63 = vpop.eup %1743  ;;  %v917_v27 = vunpack.c.l.bf16 %v914_v17  ;;  %v1025_v17 = vld [vmem:[#allocation3 + $0x70] sm:$0xff] }
 0x5bf   :  { %v1746_v37 = vpop.eup %1745 }
 0x5c0   :  { %v904_v40 = vadd.f32 0.5, %v901_v30  ;;  %v908_v35 = vmul.f32 %v1744_v63, %v903_v29  ;;  %v902_v38 = vmul.f32 0.5, %v1746_v37 }
 0x5c2   :  { %v907_v34 = vmul.f32 %v904_v40, %v2221_v57  ;;  %v905_v39 = vadd.f32 0.5, %v902_v38  ;;  %v2313_v57 = vld [vmem:[#allocation6 + $0x6c] ss:$16 sps:$4 sm:$0xff]  }
 0x5c4   :  { %v2263_v36 = vadd.f32 %v908_v35, %v907_v34 }
 0x5c6   :  { %1747 = vtanh.f32 %v2263_v36 }
 0x5d3   :  { %v1748_v41 = vpop.eup %1747 }
 0x5d4   :  { %v911_v42 = vmul.f32 %v1748_v41, %v905_v39 }
 0x5d6   :  { %v919_v43 = vpack.c.bf16 %v911_v42, %v911_v42 }
 0x5d8   :  { %953 = vmatmul.mubr.bf16.vlgmr.msra.gmra.mxu0 %v919_v43  ;;  %994 = vmatmul.mubr.bf16.vlgmr.msra.gmra.mxu1 %v919_v43 }
 0x5d9   :  { %1033 = vmatpush1.bf16.msra.mxu0 %v2266_v44  ;;  %1074 = vmatpush1.bf16.msra.mxu1 %v2269_v1 }
 0x5da   :  { %1034 = vmatprep.subr.bf16.mxu0 %v2272_v2  ;;  %1075 = vmatprep.subr.bf16.mxu1 %v2275_v45 }
 0x5db   :  { %1064 = vmatprep.mubr.bf16.mxu0 %v1911_v0  ;;  %1105 = vmatprep.mubr.bf16.mxu1 %v1911_v0 }
 0x5dd   :  { %1035 = vmatpush1.bf16.msra.mxu0 %v2280_v46  ;;  %1076 = vmatpush1.bf16.msra.mxu1 %v2283_v47 }
 0x5de   :  { %1036 = vmatprep.subr.bf16.mxu0 %v2286_v48  ;;  %1077 = vmatprep.subr.bf16.mxu1 %v2289_v49 }
 0x5e1   :  { %1037 = vmatpush1.bf16.msra.mxu0 %v2292_v50  ;;  %1078 = vmatpush1.bf16.msra.mxu1 %v2295_v51 }
 0x5e2   :  { %1038 = vmatprep.subr.bf16.mxu0 %v2298_v52  ;;  %1079 = vmatprep.subr.bf16.mxu1 %v2301_v53 }
 0x5e5   :  { %1039 = vmatpush1.bf16.msra.mxu0 %v2304_v54  ;;  %1080 = vmatpush1.bf16.msra.mxu1 %v2307_v55 }
 0x5e6   :  { %1040 = vmatprep.subr.bf16.mxu0 %v2310_v56  ;;  %1081 = vmatprep.subr.bf16.mxu1 %v2313_v57 }
 0x5e9   :  { %1041 = vmatpush1.bf16.msra.mxu0 %v2316_v58  ;;  %1082 = vmatpush1.bf16.msra.mxu1 %v2319_v33 }
 0x5ea   :  { %1042 = vmatprep.subr.bf16.mxu0 %v2322_v59  ;;  %1083 = vmatprep.subr.bf16.mxu1 %v2325_v60 }
 0x5ed   :  { %1043 = vmatpush1.bf16.msra.mxu0 %v2328_v61  ;;  %1084 = vmatpush1.bf16.msra.mxu1 %v2331_v62 }
 0x5ee   :  { %1044 = vmatprep.subr.bf16.mxu0 %v2334_v5  ;;  %1085 = vmatprep.subr.bf16.mxu1 %v2337_v6 }
 0x5f1   :  { %1045 = vmatpush1.bf16.msra.mxu0 %v2340_v7  ;;  %1086 = vmatpush1.bf16.msra.mxu1 %v2343_v8 }
 0x5f2   :  { %1046 = vmatprep.subr.bf16.mxu0 %v2346_v9  ;;  %1087 = vmatprep.subr.bf16.mxu1 %v2349_v10 }
 0x5f5   :  { %1047 = vmatpush1.bf16.msra.mxu0 %v2025_v31  ;;  %1088 = vmatpush1.bf16.msra.mxu1 %v2027_v32 }
 0x5f6   :  { %1144 = vmatprep.subr.bf16.mxu0 %v2256_v3  ;;  %1185 = vmatprep.subr.bf16.mxu1 %v2259_v4 }
 0x698   :  { %v954_v14 = vpop.f32.mrf.mxu0  ;;  %v995_v15 = vpop.f32.mrf.mxu1 }
 0x699   :  { %v1002_v16 = vadd.f32 %v954_v14, %v915_v12  ;;  %v1004_v28 = vadd.f32 %v995_v15, %v917_v27 }
 0x69a   :  { %v956_v18 = vpop.f32.mrf.mxu0  ;;  %v997_v19 = vpop.f32.mrf.mxu1 }
 0x69b   :  { %v1006_v20 = vmul.f32 0.5, %v1002_v16  ;;  %v1003_v21 = vadd.f32 %v956_v18, %v916_v13  ;;  %v1005_v26 = vadd.f32 %v997_v19, %v918_v22  ;;  %v1008_v29 = vmul.f32 0.5, %v1004_v28  ;;  %v2393_v16 = vld [vmem:[#allocation6 + $0x8] ss:$16 sps:$4 sm:$0xff]  }
 0x69c   :  { %v958_v23 = vpop.f32.mrf.mxu0  ;;  %v999_v31 = vpop.f32.mrf.mxu1  ;;  %v1027_v18 = vunpack.c.l.bf16 %v1025_v17  ;;  %v1028_v19 = vunpack.c.h.bf16 %v1025_v17 }
 0x69d   :  { %1749 = vtanh.f32 %v1006_v20  ;;  %v1007_v32 = vmul.f32 0.5, %v1003_v21  ;;  %v1026_v23 = vld [vmem:[#allocation3 + $0x78] sm:$0xff] }
 0x69e   :  { %v959_v24 = vpop.f32.mrf.mxu0  ;;  %v1000_v25 = vpop.f32.mrf.mxu1 }
 0x69f   :  { %1751 = vtanh.f32 %v1007_v32 }
 0x6a0   :  { %1753 = vtanh.f32 %v1005_v26  ;;  %v1030_v26 = vunpack.c.h.bf16 %v1026_v23 }
 0x6a1   :  { %1755 = vtanh.f32 %v1008_v29 }
 0x6aa   :  { %v1750_v30 = vpop.eup %1749 }
 0x6ab   :  { %v1012_v40 = vmul.f32 0.5, %v1750_v30 }
 0x6ac   :  { %v1752_v63 = vpop.eup %1751 }
 0x6ad   :  { %v1015_v34 = vadd.f32 0.5, %v1012_v40  ;;  %v1013_v35 = vmul.f32 0.5, %v1752_v63  ;;  %v1754_v38 = vpop.eup %1753 }
 0x6ae   :  { %v1756_v43 = vpop.eup %1755 }
 0x6af   :  { %v1016_v37 = vadd.f32 0.5, %v1013_v35  ;;  %v1020_v41 = vmul.f32 %v1754_v38, %v1015_v34  ;;  %v1014_v11 = vmul.f32 0.5, %v1756_v43  ;;  %v1029_v34 = vunpack.c.l.bf16 %v1026_v23 }
 0x6b1   :  { %v1019_v39 = vmul.f32 %v1016_v37, %v2263_v36  ;;  %v1017_v12 = vadd.f32 0.5, %v1014_v11  ;;  %v2390_v36 = vld [vmem:[#allocation6] ss:$16 sps:$4 sm:$0xff]  }
 0x6b3   :  { %v2357_v42 = vadd.f32 %v1020_v41, %v1019_v39 }
 0x6b5   :  { %1757 = vtanh.f32 %v2357_v42 }
 0x6c2   :  { %v1758_v13 = vpop.eup %1757 }
 0x6c3   :  { %v1023_v14 = vmul.f32 %v1758_v13, %v1017_v12 }
 0x6c5   :  { %v1031_v15 = vpack.c.bf16 %v1023_v14, %v1023_v14 }
 0x6c7   :  { %1065 = vmatmul.mubr.bf16.vlgmr.msra.gmra.mxu0 %v1031_v15  ;;  %1106 = vmatmul.mubr.bf16.vlgmr.msra.gmra.mxu1 %v1031_v15 }
 0x6c8   :  { %1145 = vmatpush1.bf16.msra.mxu0 %v2266_v44  ;;  %1186 = vmatpush1.bf16.msra.mxu1 %v2269_v1 }
 0x6c9   :  { %1146 = vmatprep.subr.bf16.mxu0 %v2272_v2  ;;  %1187 = vmatprep.subr.bf16.mxu1 %v2275_v45 }
 0x6ca   :  { %1176 = vmatprep.mubr.bf16.mxu0 %v1911_v0  ;;  %1217 = vmatprep.mubr.bf16.mxu1 %v1911_v0 }
 0x6cc   :  { %1147 = vmatpush1.bf16.msra.mxu0 %v2280_v46  ;;  %1188 = vmatpush1.bf16.msra.mxu1 %v2283_v47 }
 0x6cd   :  { %1148 = vmatprep.subr.bf16.mxu0 %v2286_v48  ;;  %1189 = vmatprep.subr.bf16.mxu1 %v2289_v49 }
 0x6d0   :  { %1149 = vmatpush1.bf16.msra.mxu0 %v2292_v50  ;;  %1190 = vmatpush1.bf16.msra.mxu1 %v2295_v51 }
 0x6d1   :  { %1150 = vmatprep.subr.bf16.mxu0 %v2298_v52  ;;  %1191 = vmatprep.subr.bf16.mxu1 %v2301_v53 }
 0x6d4   :  { %1151 = vmatpush1.bf16.msra.mxu0 %v2304_v54  ;;  %1192 = vmatpush1.bf16.msra.mxu1 %v2307_v55 }
 0x6d5   :  { %1152 = vmatprep.subr.bf16.mxu0 %v2310_v56  ;;  %1193 = vmatprep.subr.bf16.mxu1 %v2313_v57 }
 0x6d8   :  { %1153 = vmatpush1.bf16.msra.mxu0 %v2316_v58  ;;  %1194 = vmatpush1.bf16.msra.mxu1 %v2319_v33 }
 0x6d9   :  { %1154 = vmatprep.subr.bf16.mxu0 %v2322_v59  ;;  %1195 = vmatprep.subr.bf16.mxu1 %v2325_v60 }
 0x6dc   :  { %1155 = vmatpush1.bf16.msra.mxu0 %v2328_v61  ;;  %1196 = vmatpush1.bf16.msra.mxu1 %v2331_v62 }
 0x6dd   :  { %1156 = vmatprep.subr.bf16.mxu0 %v2334_v5  ;;  %1197 = vmatprep.subr.bf16.mxu1 %v2337_v6 }
 0x6e0   :  { %1157 = vmatpush1.bf16.msra.mxu0 %v2340_v7  ;;  %1198 = vmatpush1.bf16.msra.mxu1 %v2343_v8 }
 0x6e1   :  { %1158 = vmatprep.subr.bf16.mxu0 %v2346_v9  ;;  %1199 = vmatprep.subr.bf16.mxu1 %v2349_v10 }
 0x6e4   :  { %1159 = vmatpush1.bf16.msra.mxu0 %v2390_v36  ;;  %1200 = vmatpush1.bf16.msra.mxu1 %v2393_v16 }
 0x6e5   :  { %1256 = vmatprep.subr.bf16.mxu0 %v2256_v3  ;;  %1297 = vmatprep.subr.bf16.mxu1 %v2259_v4 }
 0x787   :  { %v1066_v20 = vpop.f32.mrf.mxu0  ;;  %v1107_v21 = vpop.f32.mrf.mxu1 }
 0x788   :  { %v1114_v22 = vadd.f32 %v1066_v20, %v1027_v18  ;;  %v1116_v35 = vadd.f32 %v1107_v21, %v1029_v34 }
 0x789   :  { %v1068_v31 = vpop.f32.mrf.mxu0  ;;  %v1109_v32 = vpop.f32.mrf.mxu1 }
 0x78a   :  { %v1118_v24 = vmul.f32 0.5, %v1114_v22  ;;  %v1115_v25 = vadd.f32 %v1068_v31, %v1028_v19  ;;  %v1117_v63 = vadd.f32 %v1109_v32, %v1030_v26  ;;  %v1120_v37 = vmul.f32 0.5, %v1116_v35 }
 0x78b   :  { %v1070_v27 = vpop.f32.mrf.mxu0  ;;  %v1111_v28 = vpop.f32.mrf.mxu1 }
 0x78c   :  { %1759 = vtanh.f32 %v1118_v24  ;;  %v1119_v29 = vmul.f32 0.5, %v1115_v25  ;;  %v1138_v27 = vld [vmem:[#allocation3 + $0x88] sm:$0xff] }
 0x78d   :  { %v1071_v30 = vpop.f32.mrf.mxu0  ;;  %v1112_v40 = vpop.f32.mrf.mxu1 }
 0x78e   :  { %1761 = vtanh.f32 %v1119_v29 }
 0x78f   :  { %1763 = vtanh.f32 %v1117_v63  ;;  %v1142_v63 = vunpack.c.h.bf16 %v1138_v27 }
 0x790   :  { %1765 = vtanh.f32 %v1120_v37 }
 0x799   :  { %v1760_v38 = vpop.eup %1759 }
 0x79a   :  { %v1124_v39 = vmul.f32 0.5, %v1760_v38 }
 0x79b   :  { %v1762_v41 = vpop.eup %1761 }
 0x79c   :  { %v1127_v43 = vadd.f32 0.5, %v1124_v39  ;;  %v1125_v11 = vmul.f32 0.5, %v1762_v41  ;;  %v1764_v13 = vpop.eup %1763 }
 0x79d   :  { %v1766_v18 = vpop.eup %1765 }
 0x79e   :  { %v1128_v12 = vadd.f32 0.5, %v1125_v11  ;;  %v1132_v15 = vmul.f32 %v1764_v13, %v1127_v43  ;;  %v1126_v19 = vmul.f32 0.5, %v1766_v18  ;;  %v1141_v43 = vunpack.c.l.bf16 %v1138_v27 }
 0x7a0   :  { %v1131_v14 = vmul.f32 %v1128_v12, %v2357_v42  ;;  %v1129_v20 = vadd.f32 0.5, %v1126_v19  ;;  %v1137_v42 = vld [vmem:[#allocation3 + $0x80] sm:$0xff] }
 0x7a1   :  { %v1139_v31 = vunpack.c.l.bf16 %v1137_v42  ;;  %v1140_v32 = vunpack.c.h.bf16 %v1137_v42 }
 0x7a2   :  { %v2399_v17 = vadd.f32 %v1132_v15, %v1131_v14 }
 0x7a4   :  { %1767 = vtanh.f32 %v2399_v17 }
 0x7b1   :  { %v1768_v21 = vpop.eup %1767 }
 0x7b2   :  { %v1135_v22 = vmul.f32 %v1768_v21, %v1129_v20 }
 0x7b4   :  { %v1143_v23 = vpack.c.bf16 %v1135_v22, %v1135_v22 }
 0x7b6   :  { %1177 = vmatmul.mubr.bf16.vlgmr.msra.gmra.mxu0 %v1143_v23  ;;  %1218 = vmatmul.mubr.bf16.vlgmr.msra.gmra.mxu1 %v1143_v23 }
 0x7b7   :  { %1257 = vmatpush1.bf16.msra.mxu0 %v2266_v44  ;;  %1298 = vmatpush1.bf16.msra.mxu1 %v2269_v1 }
 0x7b8   :  { %1258 = vmatprep.subr.bf16.mxu0 %v2272_v2  ;;  %1299 = vmatprep.subr.bf16.mxu1 %v2275_v45 }
 0x7b9   :  { %1288 = vmatprep.mubr.bf16.mxu0 %v1911_v0  ;;  %1329 = vmatprep.mubr.bf16.mxu1 %v1911_v0 }
 0x7bb   :  { %1259 = vmatpush1.bf16.msra.mxu0 %v2280_v46  ;;  %1300 = vmatpush1.bf16.msra.mxu1 %v2283_v47 }
 0x7bc   :  { %1260 = vmatprep.subr.bf16.mxu0 %v2286_v48  ;;  %1301 = vmatprep.subr.bf16.mxu1 %v2289_v49 }
 0x7bf   :  { %1261 = vmatpush1.bf16.msra.mxu0 %v2292_v50  ;;  %1302 = vmatpush1.bf16.msra.mxu1 %v2295_v51 }
 0x7c0   :  { %1262 = vmatprep.subr.bf16.mxu0 %v2298_v52  ;;  %1303 = vmatprep.subr.bf16.mxu1 %v2301_v53 }
 0x7c3   :  { %1263 = vmatpush1.bf16.msra.mxu0 %v2304_v54  ;;  %1304 = vmatpush1.bf16.msra.mxu1 %v2307_v55 }
 0x7c4   :  { %1264 = vmatprep.subr.bf16.mxu0 %v2310_v56  ;;  %1305 = vmatprep.subr.bf16.mxu1 %v2313_v57 }
 0x7c7   :  { %1265 = vmatpush1.bf16.msra.mxu0 %v2316_v58  ;;  %1306 = vmatpush1.bf16.msra.mxu1 %v2319_v33 }
 0x7c8   :  { %1266 = vmatprep.subr.bf16.mxu0 %v2322_v59  ;;  %1307 = vmatprep.subr.bf16.mxu1 %v2325_v60 }
 0x7cb   :  { %1267 = vmatpush1.bf16.msra.mxu0 %v2328_v61  ;;  %1308 = vmatpush1.bf16.msra.mxu1 %v2331_v62 }
 0x7cc   :  { %1268 = vmatprep.subr.bf16.mxu0 %v2334_v5  ;;  %1309 = vmatprep.subr.bf16.mxu1 %v2337_v6 }
 0x7cf   :  { %1269 = vmatpush1.bf16.msra.mxu0 %v2340_v7  ;;  %1310 = vmatpush1.bf16.msra.mxu1 %v2343_v8 }
 0x7d0   :  { %1270 = vmatprep.subr.bf16.mxu0 %v2346_v9  ;;  %1311 = vmatprep.subr.bf16.mxu1 %v2349_v10 }
 0x7d3   :  { %1271 = vmatpush1.bf16.msra.mxu0 %v2390_v36  ;;  %1312 = vmatpush1.bf16.msra.mxu1 %v2393_v16 }
 0x7d4   :  { %1368 = vmatprep.subr.bf16.mxu0 %v2256_v3  ;;  %1409 = vmatprep.subr.bf16.mxu1 %v2259_v4 }
 0x876   :  { %v1178_v24 = vpop.f32.mrf.mxu0  ;;  %v1219_v25 = vpop.f32.mrf.mxu1 }
 0x877   :  { %v1226_v26 = vadd.f32 %v1178_v24, %v1139_v31  ;;  %v1228_v11 = vadd.f32 %v1219_v25, %v1141_v43 }
 0x878   :  { %v1180_v28 = vpop.f32.mrf.mxu0  ;;  %v1221_v29 = vpop.f32.mrf.mxu1 }
 0x879   :  { %v1230_v30 = vmul.f32 0.5, %v1226_v26  ;;  %v1227_v40 = vadd.f32 %v1180_v28, %v1140_v32  ;;  %v1229_v41 = vadd.f32 %v1221_v29, %v1142_v63  ;;  %v1232_v12 = vmul.f32 0.5, %v1228_v11 }
 0x87a   :  { %v1182_v34 = vpop.f32.mrf.mxu0  ;;  %v1223_v35 = vpop.f32.mrf.mxu1 }
 0x87b   :  { %1769 = vtanh.f32 %v1230_v30  ;;  %v1231_v37 = vmul.f32 0.5, %v1227_v40  ;;  %v1250_v34 = vld [vmem:[#allocation3 + $0x98] sm:$0xff] }
 0x87c   :  { %v1183_v38 = vpop.f32.mrf.mxu0  ;;  %v1224_v39 = vpop.f32.mrf.mxu1 }
 0x87d   :  { %1771 = vtanh.f32 %v1231_v37 }
 0x87e   :  { %1773 = vtanh.f32 %v1229_v41  ;;  %v1254_v41 = vunpack.c.h.bf16 %v1250_v34 }
 0x87f   :  { %1775 = vtanh.f32 %v1232_v12 }
 0x888   :  { %v1770_v13 = vpop.eup %1769 }
 0x889   :  { %v1236_v14 = vmul.f32 0.5, %v1770_v13 }
 0x88a   :  { %v1772_v15 = vpop.eup %1771 }
 0x88b   :  { %v1239_v18 = vadd.f32 0.5, %v1236_v14  ;;  %v1237_v19 = vmul.f32 0.5, %v1772_v15  ;;  %v1774_v21 = vpop.eup %1773  ;;  %v1253_v14 = vunpack.c.l.bf16 %v1250_v34 }
 0x88c   :  { %v1776_v31 = vpop.eup %1775 }
 0x88d   :  { %v1240_v20 = vadd.f32 0.5, %v1237_v19  ;;  %v1244_v23 = vmul.f32 %v1774_v21, %v1239_v18  ;;  %v1238_v32 = vmul.f32 0.5, %v1776_v31 }
 0x88f   :  { %v1243_v22 = vmul.f32 %v1240_v20, %v2399_v17  ;;  %v1241_v24 = vadd.f32 0.5, %v1238_v32  ;;  %v1249_v17 = vld [vmem:[#allocation3 + $0x90] sm:$0xff] }
 0x890   :  { %v1251_v28 = vunpack.c.l.bf16 %v1249_v17  ;;  %v1252_v29 = vunpack.c.h.bf16 %v1249_v17 }
 0x891   :  { %v2437_v42 = vadd.f32 %v1244_v23, %v1243_v22 }
 0x893   :  { %1777 = vtanh.f32 %v2437_v42 }
 0x8a0   :  { %v1778_v25 = vpop.eup %1777 }
 0x8a1   :  { %v1247_v26 = vmul.f32 %v1778_v25, %v1241_v24 }
 0x8a3   :  { %v1255_v27 = vpack.c.bf16 %v1247_v26, %v1247_v26 }
 0x8a5   :  { %1289 = vmatmul.mubr.bf16.vlgmr.msra.gmra.mxu0 %v1255_v27  ;;  %1330 = vmatmul.mubr.bf16.vlgmr.msra.gmra.mxu1 %v1255_v27 }
 0x8a6   :  { %1369 = vmatpush1.bf16.msra.mxu0 %v2266_v44  ;;  %1410 = vmatpush1.bf16.msra.mxu1 %v2269_v1 }
 0x8a7   :  { %1370 = vmatprep.subr.bf16.mxu0 %v2272_v2  ;;  %1411 = vmatprep.subr.bf16.mxu1 %v2275_v45 }
 0x8a8   :  { %1400 = vmatprep.mubr.bf16.mxu0 %v1911_v0  ;;  %1441 = vmatprep.mubr.bf16.mxu1 %v1911_v0 }
 0x8aa   :  { %1371 = vmatpush1.bf16.msra.mxu0 %v2280_v46  ;;  %1412 = vmatpush1.bf16.msra.mxu1 %v2283_v47 }
 0x8ab   :  { %1372 = vmatprep.subr.bf16.mxu0 %v2286_v48  ;;  %1413 = vmatprep.subr.bf16.mxu1 %v2289_v49 }
 0x8ae   :  { %1373 = vmatpush1.bf16.msra.mxu0 %v2292_v50  ;;  %1414 = vmatpush1.bf16.msra.mxu1 %v2295_v51 }
 0x8af   :  { %1374 = vmatprep.subr.bf16.mxu0 %v2298_v52  ;;  %1415 = vmatprep.subr.bf16.mxu1 %v2301_v53 }
 0x8b2   :  { %1375 = vmatpush1.bf16.msra.mxu0 %v2304_v54  ;;  %1416 = vmatpush1.bf16.msra.mxu1 %v2307_v55 }
 0x8b3   :  { %1376 = vmatprep.subr.bf16.mxu0 %v2310_v56  ;;  %1417 = vmatprep.subr.bf16.mxu1 %v2313_v57 }
 0x8b6   :  { %1377 = vmatpush1.bf16.msra.mxu0 %v2316_v58  ;;  %1418 = vmatpush1.bf16.msra.mxu1 %v2319_v33 }
 0x8b7   :  { %1378 = vmatprep.subr.bf16.mxu0 %v2322_v59  ;;  %1419 = vmatprep.subr.bf16.mxu1 %v2325_v60 }
 0x8ba   :  { %1379 = vmatpush1.bf16.msra.mxu0 %v2328_v61  ;;  %1420 = vmatpush1.bf16.msra.mxu1 %v2331_v62 }
 0x8bb   :  { %1380 = vmatprep.subr.bf16.mxu0 %v2334_v5  ;;  %1421 = vmatprep.subr.bf16.mxu1 %v2337_v6 }
 0x8be   :  { %1381 = vmatpush1.bf16.msra.mxu0 %v2340_v7  ;;  %1422 = vmatpush1.bf16.msra.mxu1 %v2343_v8 }
 0x8bf   :  { %1382 = vmatprep.subr.bf16.mxu0 %v2346_v9  ;;  %1423 = vmatprep.subr.bf16.mxu1 %v2349_v10 }
 0x8c2   :  { %1383 = vmatpush1.bf16.msra.mxu0 %v2390_v36  ;;  %1424 = vmatpush1.bf16.msra.mxu1 %v2393_v16 }
 0x8c3   :  { %1480 = vmatprep.subr.bf16.mxu0 %v2256_v3  ;;  %1521 = vmatprep.subr.bf16.mxu1 %v2259_v4 }
 0x965   :  { %v1290_v30 = vpop.f32.mrf.mxu0  ;;  %v1331_v40 = vpop.f32.mrf.mxu1 }
 0x966   :  { %v1338_v63 = vadd.f32 %v1290_v30, %v1251_v28  ;;  %v1340_v15 = vadd.f32 %v1331_v40, %v1253_v14 }
 0x967   :  { %v1292_v35 = vpop.f32.mrf.mxu0  ;;  %v1333_v37 = vpop.f32.mrf.mxu1 }
 0x968   :  { %v1342_v38 = vmul.f32 0.5, %v1338_v63  ;;  %v1339_v39 = vadd.f32 %v1292_v35, %v1252_v29  ;;  %v1341_v4 = vadd.f32 %v1333_v37, %v1254_v41  ;;  %v1344_v18 = vmul.f32 0.5, %v1340_v15 }
 0x969   :  { %v1294_v43 = vpop.f32.mrf.mxu0  ;;  %v1335_v11 = vpop.f32.mrf.mxu1 }
 0x96a   :  { %1779 = vtanh.f32 %v1342_v38  ;;  %v1343_v12 = vmul.f32 0.5, %v1339_v39  ;;  %v1473_v39 = vld [vmem:[#allocation3 + $0xb0] sm:$0xff] }
 0x96b   :  { %v1295_v13 = vpop.f32.mrf.mxu0  ;;  %v1336_v3 = vpop.f32.mrf.mxu1  ;;  %v1475_v41 = vunpack.c.l.bf16 %v1473_v39  ;;  %v1476_v43 = vunpack.c.h.bf16 %v1473_v39 }
 0x96c   :  { %1781 = vtanh.f32 %v1343_v12  ;;  %v1474_v3 = vld [vmem:[#allocation3 + $0xb8] sm:$0xff] }
 0x96d   :  { %1783 = vtanh.f32 %v1341_v4 }
 0x96e   :  { %1785 = vtanh.f32 %v1344_v18 }
 0x977   :  { %v1780_v19 = vpop.eup %1779 }
 0x978   :  { %v1348_v20 = vmul.f32 0.5, %v1780_v19  ;;  %v1478_v19 = vunpack.c.h.bf16 %v1474_v3 }
 0x979   :  { %v1782_v21 = vpop.eup %1781 }
 0x97a   :  { %v1351_v22 = vadd.f32 0.5, %v1348_v20  ;;  %v1349_v23 = vmul.f32 0.5, %v1782_v21  ;;  %v1784_v32 = vpop.eup %1783 }
 0x97b   :  { %v1786_v27 = vpop.eup %1785 }
 0x97c   :  { %v1352_v31 = vadd.f32 0.5, %v1349_v23  ;;  %v1356_v25 = vmul.f32 %v1784_v32, %v1351_v22  ;;  %v1350_v17 = vmul.f32 0.5, %v1786_v27 }
 0x97e   :  { %v1355_v24 = vmul.f32 %v1352_v31, %v2437_v42  ;;  %v1353_v28 = vadd.f32 0.5, %v1350_v17 }
 0x980   :  { %v2475_v26 = vadd.f32 %v1356_v25, %v1355_v24  ;;  %v1477_v24 = vunpack.c.l.bf16 %v1474_v3 }
 0x982   :  { %1787 = vtanh.f32 %v2475_v26 }
 0x98f   :  { %v1788_v29 = vpop.eup %1787 }
 0x990   :  { %v1359_v30 = vmul.f32 %v1788_v29, %v1353_v28 }
 0x992   :  { %v1367_v40 = vpack.c.bf16 %v1359_v30, %v1359_v30 }
 0x994   :  { %1401 = vmatmul.mubr.bf16.vlgmr.msra.gmra.mxu0 %v1367_v40  ;;  %1442 = vmatmul.mubr.bf16.vlgmr.msra.gmra.mxu1 %v1367_v40 }
 0x995   :  { %1481 = vmatpush1.bf16.msra.mxu0 %v2266_v44  ;;  %1522 = vmatpush1.bf16.msra.mxu1 %v2269_v1 }
 0x996   :  { %1482 = vmatprep.subr.bf16.mxu0 %v2272_v2  ;;  %1523 = vmatprep.subr.bf16.mxu1 %v2275_v45 }
 0x997   :  { %1512 = vmatprep.mubr.bf16.mxu0 %v1911_v0  ;;  %1553 = vmatprep.mubr.bf16.mxu1 %v1911_v0  ;;  %v1361_v0 = vld [vmem:[#allocation3 + $0xa0] sm:$0xff] }
 0x998   :  { %v1363_v44 = vunpack.c.l.bf16 %v1361_v0  ;;  %v1364_v1 = vunpack.c.h.bf16 %v1361_v0 }
 0x999   :  { %1483 = vmatpush1.bf16.msra.mxu0 %v2280_v46  ;;  %1524 = vmatpush1.bf16.msra.mxu1 %v2283_v47  ;;  %v1362_v47 = vld [vmem:[#allocation3 + $0xa8] sm:$0xff] }
 0x99a   :  { %1484 = vmatprep.subr.bf16.mxu0 %v2286_v48  ;;  %1525 = vmatprep.subr.bf16.mxu1 %v2289_v49 }
 0x99d   :  { %1485 = vmatpush1.bf16.msra.mxu0 %v2292_v50  ;;  %1526 = vmatpush1.bf16.msra.mxu1 %v2295_v51 }
 0x99e   :  { %1486 = vmatprep.subr.bf16.mxu0 %v2298_v52  ;;  %1527 = vmatprep.subr.bf16.mxu1 %v2301_v53  ;;  %v1366_v52 = vunpack.c.h.bf16 %v1362_v47 }
 0x9a1   :  { %1487 = vmatpush1.bf16.msra.mxu0 %v2304_v54  ;;  %1528 = vmatpush1.bf16.msra.mxu1 %v2307_v55 }
 0x9a2   :  { %1488 = vmatprep.subr.bf16.mxu0 %v2310_v56  ;;  %1529 = vmatprep.subr.bf16.mxu1 %v2313_v57 }
 0x9a5   :  { %1489 = vmatpush1.bf16.msra.mxu0 %v2316_v58  ;;  %1530 = vmatpush1.bf16.msra.mxu1 %v2319_v33  ;;  %v1365_v33 = vunpack.c.l.bf16 %v1362_v47 }
 0x9a6   :  { %1490 = vmatprep.subr.bf16.mxu0 %v2322_v59  ;;  %1531 = vmatprep.subr.bf16.mxu1 %v2325_v60 }
 0x9a9   :  { %1491 = vmatpush1.bf16.msra.mxu0 %v2328_v61  ;;  %1532 = vmatpush1.bf16.msra.mxu1 %v2331_v62 }
 0x9aa   :  { %1492 = vmatprep.subr.bf16.mxu0 %v2334_v5  ;;  %1533 = vmatprep.subr.bf16.mxu1 %v2337_v6 }
 0x9ad   :  { %1493 = vmatpush1.bf16.msra.mxu0 %v2340_v7  ;;  %1534 = vmatpush1.bf16.msra.mxu1 %v2343_v8 }
 0x9ae   :  { %1494 = vmatprep.subr.bf16.mxu0 %v2346_v9  ;;  %1535 = vmatprep.subr.bf16.mxu1 %v2349_v10 }
 0x9b1   :  { %1495 = vmatpush1.bf16.msra.mxu0 %v2390_v36  ;;  %1536 = vmatpush1.bf16.msra.mxu1 %v2393_v16 }
 0xa54   :  { %v1402_v2 = vpop.f32.mrf.mxu0  ;;  %v1443_v45 = vpop.f32.mrf.mxu1 }
 0xa55   :  { %v1450_v46 = vadd.f32 %v1402_v2, %v1363_v44  ;;  %v1452_v59 = vadd.f32 %v1443_v45, %v1365_v33 }
 0xa56   :  { %v1404_v48 = vpop.f32.mrf.mxu0  ;;  %v1445_v49 = vpop.f32.mrf.mxu1 }
 0xa57   :  { %v1454_v50 = vmul.f32 0.5, %v1450_v46  ;;  %v1451_v51 = vadd.f32 %v1404_v48, %v1364_v1  ;;  %v1453_v58 = vadd.f32 %v1445_v49, %v1366_v52  ;;  %v1456_v60 = vmul.f32 0.5, %v1452_v59 }
 0xa58   :  { %v1406_v53 = vpop.f32.mrf.mxu0  ;;  %v1447_v54 = vpop.f32.mrf.mxu1 }
 0xa59   :  { %1789 = vtanh.f32 %v1454_v50  ;;  %v1455_v55 = vmul.f32 0.5, %v1451_v51 }
 0xa5a   :  { %v1407_v56 = vpop.f32.mrf.mxu0  ;;  %v1448_v57 = vpop.f32.mrf.mxu1 }
 0xa5b   :  { %1791 = vtanh.f32 %v1455_v55 }
 0xa5c   :  { %1793 = vtanh.f32 %v1453_v58 }
 0xa5d   :  { %1795 = vtanh.f32 %v1456_v60 }
 0xa66   :  { %v1790_v61 = vpop.eup %1789 }
 0xa67   :  { %v1460_v62 = vmul.f32 0.5, %v1790_v61 }
 0xa68   :  { %v1792_v5 = vpop.eup %1791 }
 0xa69   :  { %v1463_v6 = vadd.f32 0.5, %v1460_v62  ;;  %v1461_v7 = vmul.f32 0.5, %v1792_v5  ;;  %v1794_v9 = vpop.eup %1793 }
 0xa6a   :  { %v1796_v42 = vpop.eup %1795 }
 0xa6b   :  { %v1464_v8 = vadd.f32 0.5, %v1461_v7  ;;  %v1468_v36 = vmul.f32 %v1794_v9, %v1463_v6  ;;  %v1462_v63 = vmul.f32 0.5, %v1796_v42 }
 0xa6d   :  { %v1467_v10 = vmul.f32 %v1464_v8, %v2475_v26  ;;  %v1465_v34 = vadd.f32 0.5, %v1462_v63 }
 0xa6f   :  { %v1469_v16 = vadd.f32 %v1468_v36, %v1467_v10 }
 0xa71   :  { %1797 = vtanh.f32 %v1469_v16 }
 0xa7e   :  { %v1798_v35 = vpop.eup %1797 }
 0xa7f   :  { %v1471_v37 = vmul.f32 %v1798_v35, %v1465_v34 }
 0xa81   :  { %v1479_v38 = vpack.c.bf16 %v1471_v37, %v1471_v37 }
 0xa83   :  { %1513 = vmatmul.mubr.bf16.vlgmr.msra.gmra.mxu0 %v1479_v38  ;;  %1554 = vmatmul.mubr.bf16.vlgmr.msra.gmra.mxu1 %v1479_v38 }
 0xb43   :  { %v1514_v11 = vpop.f32.mrf.mxu0  ;;  %v1555_v12 = vpop.f32.mrf.mxu1 }
 0xb44   :  { %v1562_v13 = vadd.f32 %v1514_v11, %v1475_v41  ;;  %v1564_v25 = vadd.f32 %v1555_v12, %v1477_v24 }
 0xb45   :  { %v1516_v4 = vpop.f32.mrf.mxu0  ;;  %v1557_v14 = vpop.f32.mrf.mxu1 }
 0xb46   :  { %v1566_v15 = vmul.f32 0.5, %v1562_v13  ;;  %v1563_v18 = vadd.f32 %v1516_v4, %v1476_v43  ;;  %v1565_v32 = vadd.f32 %v1557_v14, %v1478_v19  ;;  %v1568_v26 = vmul.f32 0.5, %v1564_v25 }
 0xb47   :  { %v1518_v20 = vpop.f32.mrf.mxu0  ;;  %v1559_v21 = vpop.f32.mrf.mxu1 }
 0xb48   :  { %1799 = vtanh.f32 %v1566_v15  ;;  %v1567_v22 = vmul.f32 0.5, %v1563_v18 }
 0xb49   :  { %v1519_v23 = vpop.f32.mrf.mxu0  ;;  %v1560_v31 = vpop.f32.mrf.mxu1 }
 0xb4a   :  { %1801 = vtanh.f32 %v1567_v22 }
 0xb4b   :  { %1803 = vtanh.f32 %v1565_v32 }
 0xb4c   :  { %1805 = vtanh.f32 %v1568_v26 }
 0xb55   :  { %v1800_v27 = vpop.eup %1799 }
 0xb56   :  { %v1572_v17 = vmul.f32 0.5, %v1800_v27 }
 0xb57   :  { %v1802_v28 = vpop.eup %1801 }
 0xb58   :  { %v1575_v29 = vadd.f32 0.5, %v1572_v17  ;;  %v1573_v30 = vmul.f32 0.5, %v1802_v28  ;;  %v1804_v0 = vpop.eup %1803 }
 0xb59   :  { %v1806_v45 = vpop.eup %1805 }
 0xb5a   :  { %v1576_v40 = vadd.f32 0.5, %v1573_v30  ;;  %v1580_v1 = vmul.f32 %v1804_v0, %v1575_v29  ;;  %v1574_v46 = vmul.f32 0.5, %v1806_v45 }
 0xb5c   :  { %v1579_v44 = vmul.f32 %v1576_v40, %v1469_v16  ;;  %v1577_v47 = vadd.f32 0.5, %v1574_v46 }
 0xb5e   :  { %v1581_v2 = vadd.f32 %v1580_v1, %v1579_v44 }
 0xb60   :  { %1807 = vtanh.f32 %v1581_v2 }
 0xb6d   :  { %v1808_v48 = vpop.eup %1807 }
 0xb6e   :  { %v1583_v49 = vmul.f32 %v1808_v48, %v1577_v47 }
 0xb70   :  { %1584 = vst [vmem:[#allocation8] sm:$0xff] %v1583_v49 }
 0xb71   :  { %1892 = shalt.err (!%p1889_p0)
}
 0xb72   :  { %1595 = dma.vmem_to_hbm [thread:$0]  %s1593_s1, 128, %s2516_s2, [#allocation5]  }
 0xb73   :  { %1905 = dma.done.wait [#allocation5], 128  }
 0xb74   :  { %1906 = vsyncadd [#allocation5], 4294967168 }
 0xb75   :  { %1599 = vsyncpa [#allocation4], 1 }
 0xb76   :  { %1600 = vsyncpa [#allocation7], 1 }
 0xb77   :  { %1601 = vsyncpa [#allocation5], 1 }

</bundles_post_ra>
